<compile_context>
chip_gen: v7x
topology: tpu7x:2x2x1
jax: 0.10.0
libtpu: 0.0.40
codegen_flags: <defaults>
</compile_context>

<pallas_src>
import functools

import jax
import jax.numpy as jnp
from jax import lax
from jax.experimental import pallas as pl
from jax.experimental.pallas import tpu as pltpu

EPS = 1e-5
LANE = 128
VMEM_LIMIT = 48 * 1024 * 1024


def _round_up(x, m):
    return (x + m - 1) // m * m


# ----------------------------------------------------------------------------
# Pass 1: tiled  bf16 matmul (+bias)  ->  f32 conv output + partial BN stats
# ----------------------------------------------------------------------------
def _matmul_stats_kernel(p_ref, w_ref, b_ref, y_ref, stats_ref, *, tm, m_true):
    # MXU matmul, f32 accumulation
    x = jnp.dot(p_ref[...], w_ref[...], preferred_element_type=jnp.float32)
    x = x + b_ref[...]                                   # (TM, Cpad) + (1, Cpad)
    y_ref[...] = x                                       # pre-BN conv output

    # partial per-channel sums for BatchNorm; mask rows beyond the true M
    row0 = pl.program_id(0) * tm
    rows = lax.broadcasted_iota(jnp.int32, (tm, 1), 0) + row0
    xm = jnp.where(rows < m_true, x, 0.0)
    s1 = jnp.sum(xm, axis=0, keepdims=True)              # (1, Cpad)  sum(x)
    s2 = jnp.sum(xm * xm, axis=0, keepdims=True)         # (1, Cpad)  sum(x^2)
    stats_ref[0] = jnp.concatenate([s1, s2], axis=0)     # (2, Cpad)


# ----------------------------------------------------------------------------
# Pass 2: tiled BN-apply (affine) + optional ReLU + optional residual add
# ----------------------------------------------------------------------------
def _bn_apply_kernel(*refs, relu: bool, has_add: bool):
    if has_add:
        y_ref, scale_ref, shift_ref, add_ref, o_ref = refs
    else:
        y_ref, scale_ref, shift_ref, o_ref = refs
        add_ref = None

    y = y_ref[...] * scale_ref[...] + shift_ref[...]
    if relu:
        y = jnp.maximum(y, 0.0)
    if add_ref is not None:
        y = y + add_ref[...]                              # residual add (post-ReLU,
    o_ref[...] = y                                        #  matches x = conv2(x) + res)


# ----------------------------------------------------------------------------
# im2col glue (plain JAX); 1x1 convs are a pure (strided) reshape, no inflation
# ----------------------------------------------------------------------------
def _im2col(x_nhwc, kh, kw, stride, pad):
    n, h, w, c = x_nhwc.shape
    ho = (h + 2 * pad - kh) // stride + 1
    wo = (w + 2 * pad - kw) // stride + 1
    if kh == 1 and kw == 1:
        xs = x_nhwc
        if pad:
            xs = jnp.pad(xs, ((0, 0), (pad, pad), (pad, pad), (0, 0)))
        xs = xs[:, 0:stride * ho:stride, 0:stride * wo:stride, :]
        return xs.reshape(n * ho * wo, c), ho, wo
    xp = jnp.pad(x_nhwc, ((0, 0), (pad, pad), (pad, pad), (0, 0)))
    cols = []
    for dy in range(kh):
        for dx in range(kw):
            cols.append(xp[:, dy:dy + stride * ho:stride,
                           dx:dx + stride * wo:stride, :])
    patches = jnp.stack(cols, axis=3)                     # (n, ho, wo, kh*kw, c)
    return patches.reshape(n * ho * wo, kh * kw * c), ho, wo


# ----------------------------------------------------------------------------
# Fused Conv+BN(+ReLU)(+add) stage = two tiled pallas_calls
# ----------------------------------------------------------------------------
def conv_bn(x_nhwc, conv_w_oihw, conv_b, bn_gamma, bn_beta,
            *, stride, pad, relu=True, add_nhwc=None, block_m=512):
    n, h, w, cin = x_nhwc.shape
    cout, cin_w, kh, kw = conv_w_oihw.shape
    assert cin == cin_w

    patches, ho, wo = _im2col(x_nhwc, kh, kw, stride, pad)
    m = n * ho * wo
    k = kh * kw * cin

    cpad = _round_up(cout, LANE)                 # lane-dense output / MXU columns
    kpad = _round_up(k, 16)                      # bf16 sublane packing for weights
    tm = min(_round_up(block_m, 16), _round_up(m, 16))
    mpad = _round_up(m, tm)
    n_tiles = mpad // tm

    # pad + cast matmul operands to bf16 (f32 accumulation inside the kernel)
    patches = jnp.pad(patches, ((0, mpad - m), (0, kpad - k))).astype(jnp.bfloat16)
    w_mat = jnp.transpose(conv_w_oihw, (2, 3, 1, 0)).reshape(k, cout)
    w_mat = jnp.pad(w_mat, ((0, kpad - k), (0, cpad - cout))).astype(jnp.bfloat16)
    b2 = jnp.pad(conv_b.astype(jnp.float32), (0, cpad - cout)).reshape(1, cpad)

    cparams = pltpu.CompilerParams(dimension_semantics=("parallel",),
                                   vmem_limit_bytes=VMEM_LIMIT)

    cost1 = pl.CostEstimate(
        flops=2 * mpad * kpad * cpad,
        transcendentals=0,
        bytes_accessed=int(patches.size) * 2 + int(w_mat.size) * 2
                       + mpad * cpad * 4 + n_tiles * 2 * cpad * 4)

    conv_out, stats = pl.pallas_call(
        functools.partial(_matmul_stats_kernel, tm=tm, m_true=m),
        grid=(n_tiles,),
        in_specs=[
            pl.BlockSpec((tm, kpad), lambda i: (i, 0)),
            pl.BlockSpec((kpad, cpad), lambda i: (0, 0)),
            pl.BlockSpec((1, cpad), lambda i: (0, 0)),
        ],
        out_specs=[
            pl.BlockSpec((tm, cpad), lambda i: (i, 0)),
            pl.BlockSpec((1, 2, cpad), lambda i: (i, 0, 0)),
        ],
        out_shape=[
            jax.ShapeDtypeStruct((mpad, cpad), jnp.float32),
            jax.ShapeDtypeStruct((n_tiles, 2, cpad), jnp.float32),
        ],
        compiler_params=cparams,
        cost_estimate=cost1,
    )(patches, w_mat, b2)

    # finalize BatchNorm statistics (tiny (Cpad,) vectors, plain JAX, f32)
    ssum = jnp.sum(stats[:, 0, :], axis=0)
    ssq = jnp.sum(stats[:, 1, :], axis=0)
    mean = ssum / m
    var = jnp.maximum(ssq / m - mean * mean, 0.0)          # biased (training-mode) var
    gamma_p = jnp.pad(bn_gamma.astype(jnp.float32), (0, cpad - cout))
    beta_p = jnp.pad(bn_beta.astype(jnp.float32), (0, cpad - cout))
    scale = gamma_p * lax.rsqrt(var + EPS)
    shift = beta_p - mean * scale
    scale = scale.reshape(1, cpad)
    shift = shift.reshape(1, cpad)

    has_add = add_nhwc is not None
    inputs = [conv_out, scale, shift]
    in_specs2 = [pl.BlockSpec((tm, cpad), lambda i: (i, 0)),
                 pl.BlockSpec((1, cpad), lambda i: (0, 0)),
                 pl.BlockSpec((1, cpad), lambda i: (0, 0))]
    if has_add:
        addm = add_nhwc.reshape(m, cout).astype(jnp.float32)
        addm = jnp.pad(addm, ((0, mpad - m), (0, cpad - cout)))
        inputs.append(addm)
        in_specs2.append(pl.BlockSpec((tm, cpad), lambda i: (i, 0)))

    cost2 = pl.CostEstimate(
        flops=3 * mpad * cpad,
        transcendentals=0,
        bytes_accessed=(2 + int(has_add)) * mpad * cpad * 4)

    out = pl.pallas_call(
        functools.partial(_bn_apply_kernel, relu=relu, has_add=has_add),
        grid=(n_tiles,),
        in_specs=in_specs2,
        out_specs=pl.BlockSpec((tm, cpad), lambda i: (i, 0)),
        out_shape=jax.ShapeDtypeStruct((mpad, cpad), jnp.float32),
        compiler_params=cparams,
        cost_estimate=cost2,
    )(*inputs)

    return out[:m, :cout].reshape(n, ho, wo, cout)


# ----------------------------------------------------------------------------
# Block: parameter init (PyTorch-default inits) + forward
# ----------------------------------------------------------------------------
def _conv_bn_params(key, cout, cin, kh, kw):
    k1, k2 = jax.random.split(key)
    fan_in = cin * kh * kw
    bound = 1.0 / (fan_in ** 0.5)
    w = jax.random.uniform(k1, (cout, cin, kh, kw), jnp.float32, -bound, bound)
    b = jax.random.uniform(k2, (cout,), jnp.float32, -bound, bound)
    gamma = jnp.ones((cout,), jnp.float32)    # nn.BatchNorm2d default weight
    beta = jnp.zeros((cout,), jnp.float32)    # nn.BatchNorm2d default bias
    return (w, b, gamma, beta)


def init_block_params(key, in_channel, out_channel, is_bottleneck=True):
    keys = jax.random.split(key, 6)
    p = {
        "conv1": _conv_bn_params(keys[0], out_channel, in_channel, 3, 3),
        "conv2": _conv_bn_params(keys[1], out_channel, out_channel, 3, 3),
        "down":  _conv_bn_params(keys[2], out_channel, in_channel, 1, 1),
    }
    if is_bottleneck:
        mid = out_channel // 4
        p["b1"] = _conv_bn_params(keys[3], mid, out_channel, 1, 1)
        p["b2"] = _conv_bn_params(keys[4], mid, mid, 3, 3)
        p["b3"] = _conv_bn_params(keys[5], out_channel, mid, 1, 1)
    return p


def block_forward(params, x_nhwc, is_bottleneck=True, block_m=512):
    identity = x_nhwc
    # conv1: 3x3 stride 2 pad 1 + BN + ReLU
    x = conv_bn(x_nhwc, *params["conv1"], stride=2, pad=1, relu=True,
                block_m=block_m)
    # downSample: 1x1 stride 2 + BN + ReLU (on identity)
    res = conv_bn(identity, *params["down"], stride=2, pad=0, relu=True,
                  block_m=block_m)
    # conv2: 3x3 stride 1 pad 1 + BN + ReLU, residual add fused post-ReLU
    x = conv_bn(x, *params["conv2"], stride=1, pad=1, relu=True,
                add_nhwc=res, block_m=block_m)
    if is_bottleneck:
        x = conv_bn(x, *params["b1"], stride=1, pad=0, relu=True,
                    block_m=block_m)                        # 1x1 + BN + ReLU
        x = conv_bn(x, *params["b2"], stride=1, pad=1, relu=True,
                    block_m=block_m)                        # 3x3 + BN + ReLU
        x = conv_bn(x, *params["b3"], stride=1, pad=0, relu=False,
                    block_m=block_m)                        # 1x1 + BN (no ReLU)
    return x


# ----------------------------------------------------------------------------
if __name__ == "__main__":
    key = jax.random.PRNGKey(0)
    k_param, k_input = jax.random.split(key)

    N, CIN, H, W = 2, 4, 16, 16
    COUT = 8
    IS_BOTTLENECK = True

    params = init_block_params(k_param, CIN, COUT, IS_BOTTLENECK)

    # PyTorch-style NCHW input -> NHWC for the kernels
    x_nchw = jax.random.normal(k_input, (N, CIN, H, W), jnp.float32)
    x_nhwc = jnp.transpose(x_nchw, (0, 2, 3, 1))

    # block_m=64 at these toy shapes so the multi-tile grid / partial-stats
    # path is actually exercised; default of 512 is the production tile size.
    fwd = jax.jit(functools.partial(block_forward,
                                    is_bottleneck=IS_BOTTLENECK, block_m=64))
    out_nhwc = fwd(params, x_nhwc)
    out_nchw = jnp.transpose(out_nhwc, (0, 3, 1, 2))       # back to NCHW
    jax.block_until_ready(out_nchw)

    assert out_nchw.shape == (N, COUT, H // 2, W // 2)
    print("KERNEL_OK")
</pallas_src>

<mosaic_0001>
module attributes {stable_mosaic.version = 11 : i64} {
  func.func @_matmul_stats_kernel(%arg0: i32, %arg1: memref<64x48xbf16, #tpu.memory_space<vmem>>, %arg2: memref<48x128xbf16, #tpu.memory_space<vmem>>, %arg3: memref<1x128xf32, #tpu.memory_space<vmem>>, %arg4: memref<64x128xf32, #tpu.memory_space<vmem>>, %arg5: memref<1x2x128xf32, #tpu.memory_space<vmem>>) attributes {dimension_semantics = [#tpu.dimension_semantics<parallel>], iteration_bounds = array<i64: 2>, scalar_prefetch = 0 : i64, scratch_operands = 0 : i64, tpu.core_type = #tpu.core_type<tc>, window_params = [{transform_indices = @transform_0, window_bounds = array<i64: 64, 48>}, {pipeline_mode = #tpu.pipeline_mode<synchronous>, transform_indices = @transform_1, window_bounds = array<i64: 48, 128>}, {pipeline_mode = #tpu.pipeline_mode<synchronous>, transform_indices = @transform_2, window_bounds = array<i64: 1, 128>}, {transform_indices = @transform_3, window_bounds = array<i64: 64, 128>}, {transform_indices = @transform_4, window_bounds = array<i64: 1, 2, 128>}]} {
    %c0 = arith.constant 0 : index
    %c0_0 = arith.constant 0 : index
    %0 = vector.load %arg1[%c0, %c0_0] : memref<64x48xbf16, #tpu.memory_space<vmem>>, vector<64x48xbf16>
    %c0_1 = arith.constant 0 : index
    %c0_2 = arith.constant 0 : index
    %1 = vector.load %arg2[%c0_1, %c0_2] : memref<48x128xbf16, #tpu.memory_space<vmem>>, vector<48x128xbf16>
    %cst = arith.constant dense<0.000000e+00> : vector<64x128xf32>
    %2 = tpu.matmul %0, %1, %cst {dimension_numbers = #tpu.dot_dimension_numbers<[1], [0], [0], [1], [0, 0, 1, 1], [], []>} : vector<64x48xbf16>, vector<48x128xbf16>, vector<64x128xf32> -> vector<64x128xf32>
    %c0_3 = arith.constant 0 : index
    %c0_4 = arith.constant 0 : index
    %3 = vector.load %arg3[%c0_3, %c0_4] : memref<1x128xf32, #tpu.memory_space<vmem>>, vector<1x128xf32>
    %4 = vector.broadcast %3 : vector<1x128xf32> to vector<64x128xf32>
    %5 = arith.addf %2, %4 : vector<64x128xf32>
    %c0_5 = arith.constant 0 : index
    %c0_6 = arith.constant 0 : index
    %6 = vector.load %arg4[%c0_5, %c0_6] : memref<64x128xf32, #tpu.memory_space<vmem>>, vector<64x128xf32>
    tpu.vector_store %arg4[%c0_5, %c0_6], %5 {strides = array<i32>} : memref<64x128xf32, #tpu.memory_space<vmem>>, vector<64x128xf32>,
    %c64_i32 = arith.constant 64 : i32
    %7 = arith.muli %arg0, %c64_i32 : i32
    %8 = tpu.iota {dimensions = array<i32: 0>} : vector<64x1xi32>
    %9 = vector.broadcast %7 : i32 to vector<64x1xi32>
    %10 = arith.addi %8, %9 : vector<64x1xi32>
    %c128_i32 = arith.constant 128 : i32
    %11 = vector.broadcast %c128_i32 : i32 to vector<64x1xi32>
    %12 = arith.cmpi slt, %10, %11 : vector<64x1xi32>
    %cst_7 = arith.constant 0.000000e+00 : f32
    %13 = vector.shape_cast %12 : vector<64x1xi1> to vector<64x1xi1>
    %14 = vector.broadcast %13 : vector<64x1xi1> to vector<64x128xi1>
    %15 = vector.broadcast %cst_7 : f32 to vector<64x128xf32>
    %16 = arith.select %14, %5, %15 : vector<64x128xi1>, vector<64x128xf32>
    %cst_8 = arith.constant dense<0.000000e+00> : vector<128xf32>
    %17 = vector.multi_reduction <add>, %16, %cst_8 [0] : vector<64x128xf32> to vector<128xf32>
    %18 = vector.shape_cast %17 : vector<128xf32> to vector<1x128xf32>
    %19 = arith.mulf %16, %16 : vector<64x128xf32>
    %cst_9 = arith.constant dense<0.000000e+00> : vector<128xf32>
    %20 = vector.multi_reduction <add>, %19, %cst_9 [0] : vector<64x128xf32> to vector<128xf32>
    %21 = vector.shape_cast %20 : vector<128xf32> to vector<1x128xf32>
    %22 = tpu.concatenate %18, %21 in 0 : vector<1x128xf32>, vector<1x128xf32> -> vector<2x128xf32>
    %c0_10 = arith.constant 0 : index
    %c0_11 = arith.constant 0 : index
    %c0_12 = arith.constant 0 : index
    %23 = vector.load %arg5[%c0_10, %c0_11, %c0_12] : memref<1x2x128xf32, #tpu.memory_space<vmem>>, vector<1x2x128xf32>
    %24 = vector.shape_cast %23 : vector<1x2x128xf32> to vector<2x128xf32>
    %25 = vector.shape_cast %22 : vector<2x128xf32> to vector<1x2x128xf32>
    tpu.vector_store %arg5[%c0_10, %c0_11, %c0_12], %25 {strides = array<i32>} : memref<1x2x128xf32, #tpu.memory_space<vmem>>, vector<1x2x128xf32>,
    return
  }
  func.func @transform_0(%arg0: i32) -> (i32, i32) {
    %c0_i32 = arith.constant 0 : i32
    %c0_i32_0 = arith.constant 0 : i32
    return %arg0, %c0_i32 : i32, i32
  }
  func.func @transform_1(%arg0: i32) -> (i32, i32) {
    %c0_i32 = arith.constant 0 : i32
    %c0_i32_0 = arith.constant 0 : i32
    %c0_i32_1 = arith.constant 0 : i32
    return %c0_i32, %c0_i32_0 : i32, i32
  }
  func.func @transform_2(%arg0: i32) -> (i32, i32) {
    %c0_i32 = arith.constant 0 : i32
    %c0_i32_0 = arith.constant 0 : i32
    %c0_i32_1 = arith.constant 0 : i32
    return %c0_i32, %c0_i32_0 : i32, i32
  }
  func.func @transform_3(%arg0: i32) -> (i32, i32) {
    %c0_i32 = arith.constant 0 : i32
    %c0_i32_0 = arith.constant 0 : i32
    return %arg0, %c0_i32 : i32, i32
  }
  func.func @transform_4(%arg0: i32) -> (i32, i32, i32) {
    %c0_i32 = arith.constant 0 : i32
    %c0_i32_0 = arith.constant 0 : i32
    %c0_i32_1 = arith.constant 0 : i32
    return %arg0, %c0_i32, %c0_i32_0 : i32, i32, i32
  }
}

module attributes {stable_mosaic.version = 11 : i64} {
  func.func @_bn_apply_kernel(%arg0: i32, %arg1: memref<64x128xf32, #tpu.memory_space<vmem>>, %arg2: memref<1x128xf32, #tpu.memory_space<vmem>>, %arg3: memref<1x128xf32, #tpu.memory_space<vmem>>, %arg4: memref<64x128xf32, #tpu.memory_space<vmem>>) attributes {dimension_semantics = [#tpu.dimension_semantics<parallel>], iteration_bounds = array<i64: 2>, scalar_prefetch = 0 : i64, scratch_operands = 0 : i64, tpu.core_type = #tpu.core_type<tc>, window_params = [{transform_indices = @transform_0, window_bounds = array<i64: 64, 128>}, {pipeline_mode = #tpu.pipeline_mode<synchronous>, transform_indices = @transform_1, window_bounds = array<i64: 1, 128>}, {pipeline_mode = #tpu.pipeline_mode<synchronous>, transform_indices = @transform_2, window_bounds = array<i64: 1, 128>}, {transform_indices = @transform_3, window_bounds = array<i64: 64, 128>}]} {
    %c0 = arith.constant 0 : index
    %c0_0 = arith.constant 0 : index
    %0 = vector.load %arg1[%c0, %c0_0] : memref<64x128xf32, #tpu.memory_space<vmem>>, vector<64x128xf32>
    %c0_1 = arith.constant 0 : index
    %c0_2 = arith.constant 0 : index
    %1 = vector.load %arg2[%c0_1, %c0_2] : memref<1x128xf32, #tpu.memory_space<vmem>>, vector<1x128xf32>
    %2 = vector.broadcast %1 : vector<1x128xf32> to vector<64x128xf32>
    %3 = arith.mulf %0, %2 : vector<64x128xf32>
    %c0_3 = arith.constant 0 : index
    %c0_4 = arith.constant 0 : index
    %4 = vector.load %arg3[%c0_3, %c0_4] : memref<1x128xf32, #tpu.memory_space<vmem>>, vector<1x128xf32>
    %5 = vector.broadcast %4 : vector<1x128xf32> to vector<64x128xf32>
    %6 = arith.addf %3, %5 : vector<64x128xf32>
    %cst = arith.constant 0.000000e+00 : f32
    %7 = vector.broadcast %cst : f32 to vector<64x128xf32>
    %8 = arith.maximumf %6, %7 : vector<64x128xf32>
    %c0_5 = arith.constant 0 : index
    %c0_6 = arith.constant 0 : index
    %9 = vector.load %arg4[%c0_5, %c0_6] : memref<64x128xf32, #tpu.memory_space<vmem>>, vector<64x128xf32>
    tpu.vector_store %arg4[%c0_5, %c0_6], %8 {strides = array<i32>} : memref<64x128xf32, #tpu.memory_space<vmem>>, vector<64x128xf32>,
    return
  }
  func.func @transform_0(%arg0: i32) -> (i32, i32) {
    %c0_i32 = arith.constant 0 : i32
    %c0_i32_0 = arith.constant 0 : i32
    return %arg0, %c0_i32 : i32, i32
  }
  func.func @transform_1(%arg0: i32) -> (i32, i32) {
    %c0_i32 = arith.constant 0 : i32
    %c0_i32_0 = arith.constant 0 : i32
    %c0_i32_1 = arith.constant 0 : i32
    return %c0_i32, %c0_i32_0 : i32, i32
  }
  func.func @transform_2(%arg0: i32) -> (i32, i32) {
    %c0_i32 = arith.constant 0 : i32
    %c0_i32_0 = arith.constant 0 : i32
    %c0_i32_1 = arith.constant 0 : i32
    return %c0_i32, %c0_i32_0 : i32, i32
  }
  func.func @transform_3(%arg0: i32) -> (i32, i32) {
    %c0_i32 = arith.constant 0 : i32
    %c0_i32_0 = arith.constant 0 : i32
    return %arg0, %c0_i32 : i32, i32
  }
}

module attributes {stable_mosaic.version = 11 : i64} {
  func.func @_matmul_stats_kernel(%arg0: i32, %arg1: memref<64x80xbf16, #tpu.memory_space<vmem>>, %arg2: memref<80x128xbf16, #tpu.memory_space<vmem>>, %arg3: memref<1x128xf32, #tpu.memory_space<vmem>>, %arg4: memref<64x128xf32, #tpu.memory_space<vmem>>, %arg5: memref<1x2x128xf32, #tpu.memory_space<vmem>>) attributes {dimension_semantics = [#tpu.dimension_semantics<parallel>], iteration_bounds = array<i64: 2>, scalar_prefetch = 0 : i64, scratch_operands = 0 : i64, tpu.core_type = #tpu.core_type<tc>, window_params = [{transform_indices = @transform_0, window_bounds = array<i64: 64, 80>}, {pipeline_mode = #tpu.pipeline_mode<synchronous>, transform_indices = @transform_1, window_bounds = array<i64: 80, 128>}, {pipeline_mode = #tpu.pipeline_mode<synchronous>, transform_indices = @transform_2, window_bounds = array<i64: 1, 128>}, {transform_indices = @transform_3, window_bounds = array<i64: 64, 128>}, {transform_indices = @transform_4, window_bounds = array<i64: 1, 2, 128>}]} {
    %c0 = arith.constant 0 : index
    %c0_0 = arith.constant 0 : index
    %0 = vector.load %arg1[%c0, %c0_0] : memref<64x80xbf16, #tpu.memory_space<vmem>>, vector<64x80xbf16>
    %c0_1 = arith.constant 0 : index
    %c0_2 = arith.constant 0 : index
    %1 = vector.load %arg2[%c0_1, %c0_2] : memref<80x128xbf16, #tpu.memory_space<vmem>>, vector<80x128xbf16>
    %cst = arith.constant dense<0.000000e+00> : vector<64x128xf32>
    %2 = tpu.matmul %0, %1, %cst {dimension_numbers = #tpu.dot_dimension_numbers<[1], [0], [0], [1], [0, 0, 1, 1], [], []>} : vector<64x80xbf16>, vector<80x128xbf16>, vector<64x128xf32> -> vector<64x128xf32>
    %c0_3 = arith.constant 0 : index
    %c0_4 = arith.constant 0 : index
    %3 = vector.load %arg3[%c0_3, %c0_4] : memref<1x128xf32, #tpu.memory_space<vmem>>, vector<1x128xf32>
    %4 = vector.broadcast %3 : vector<1x128xf32> to vector<64x128xf32>
    %5 = arith.addf %2, %4 : vector<64x128xf32>
    %c0_5 = arith.constant 0 : index
    %c0_6 = arith.constant 0 : index
    %6 = vector.load %arg4[%c0_5, %c0_6] : memref<64x128xf32, #tpu.memory_space<vmem>>, vector<64x128xf32>
    tpu.vector_store %arg4[%c0_5, %c0_6], %5 {strides = array<i32>} : memref<64x128xf32, #tpu.memory_space<vmem>>, vector<64x128xf32>,
    %c64_i32 = arith.constant 64 : i32
    %7 = arith.muli %arg0, %c64_i32 : i32
    %8 = tpu.iota {dimensions = array<i32: 0>} : vector<64x1xi32>
    %9 = vector.broadcast %7 : i32 to vector<64x1xi32>
    %10 = arith.addi %8, %9 : vector<64x1xi32>
    %c128_i32 = arith.constant 128 : i32
    %11 = vector.broadcast %c128_i32 : i32 to vector<64x1xi32>
    %12 = arith.cmpi slt, %10, %11 : vector<64x1xi32>
    %cst_7 = arith.constant 0.000000e+00 : f32
    %13 = vector.shape_cast %12 : vector<64x1xi1> to vector<64x1xi1>
    %14 = vector.broadcast %13 : vector<64x1xi1> to vector<64x128xi1>
    %15 = vector.broadcast %cst_7 : f32 to vector<64x128xf32>
    %16 = arith.select %14, %5, %15 : vector<64x128xi1>, vector<64x128xf32>
    %cst_8 = arith.constant dense<0.000000e+00> : vector<128xf32>
    %17 = vector.multi_reduction <add>, %16, %cst_8 [0] : vector<64x128xf32> to vector<128xf32>
    %18 = vector.shape_cast %17 : vector<128xf32> to vector<1x128xf32>
    %19 = arith.mulf %16, %16 : vector<64x128xf32>
    %cst_9 = arith.constant dense<0.000000e+00> : vector<128xf32>
    %20 = vector.multi_reduction <add>, %19, %cst_9 [0] : vector<64x128xf32> to vector<128xf32>
    %21 = vector.shape_cast %20 : vector<128xf32> to vector<1x128xf32>
    %22 = tpu.concatenate %18, %21 in 0 : vector<1x128xf32>, vector<1x128xf32> -> vector<2x128xf32>
    %c0_10 = arith.constant 0 : index
    %c0_11 = arith.constant 0 : index
    %c0_12 = arith.constant 0 : index
    %23 = vector.load %arg5[%c0_10, %c0_11, %c0_12] : memref<1x2x128xf32, #tpu.memory_space<vmem>>, vector<1x2x128xf32>
    %24 = vector.shape_cast %23 : vector<1x2x128xf32> to vector<2x128xf32>
    %25 = vector.shape_cast %22 : vector<2x128xf32> to vector<1x2x128xf32>
    tpu.vector_store %arg5[%c0_10, %c0_11, %c0_12], %25 {strides = array<i32>} : memref<1x2x128xf32, #tpu.memory_space<vmem>>, vector<1x2x128xf32>,
    return
  }
  func.func @transform_0(%arg0: i32) -> (i32, i32) {
    %c0_i32 = arith.constant 0 : i32
    %c0_i32_0 = arith.constant 0 : i32
    return %arg0, %c0_i32 : i32, i32
  }
  func.func @transform_1(%arg0: i32) -> (i32, i32) {
    %c0_i32 = arith.constant 0 : i32
    %c0_i32_0 = arith.constant 0 : i32
    %c0_i32_1 = arith.constant 0 : i32
    return %c0_i32, %c0_i32_0 : i32, i32
  }
  func.func @transform_2(%arg0: i32) -> (i32, i32) {
    %c0_i32 = arith.constant 0 : i32
    %c0_i32_0 = arith.constant 0 : i32
    %c0_i32_1 = arith.constant 0 : i32
    return %c0_i32, %c0_i32_0 : i32, i32
  }
  func.func @transform_3(%arg0: i32) -> (i32, i32) {
    %c0_i32 = arith.constant 0 : i32
    %c0_i32_0 = arith.constant 0 : i32
    return %arg0, %c0_i32 : i32, i32
  }
  func.func @transform_4(%arg0: i32) -> (i32, i32, i32) {
    %c0_i32 = arith.constant 0 : i32
    %c0_i32_0 = arith.constant 0 : i32
    %c0_i32_1 = arith.constant 0 : i32
    return %arg0, %c0_i32, %c0_i32_0 : i32, i32, i32
  }
}

module attributes {stable_mosaic.version = 11 : i64} {
  func.func @_matmul_stats_kernel(%arg0: i32, %arg1: memref<64x16xbf16, #tpu.memory_space<vmem>>, %arg2: memref<16x128xbf16, #tpu.memory_space<vmem>>, %arg3: memref<1x128xf32, #tpu.memory_space<vmem>>, %arg4: memref<64x128xf32, #tpu.memory_space<vmem>>, %arg5: memref<1x2x128xf32, #tpu.memory_space<vmem>>) attributes {dimension_semantics = [#tpu.dimension_semantics<parallel>], iteration_bounds = array<i64: 2>, scalar_prefetch = 0 : i64, scratch_operands = 0 : i64, tpu.core_type = #tpu.core_type<tc>, window_params = [{transform_indices = @transform_0, window_bounds = array<i64: 64, 16>}, {pipeline_mode = #tpu.pipeline_mode<synchronous>, transform_indices = @transform_1, window_bounds = array<i64: 16, 128>}, {pipeline_mode = #tpu.pipeline_mode<synchronous>, transform_indices = @transform_2, window_bounds = array<i64: 1, 128>}, {transform_indices = @transform_3, window_bounds = array<i64: 64, 128>}, {transform_indices = @transform_4, window_bounds = array<i64: 1, 2, 128>}]} {
    %c0 = arith.constant 0 : index
    %c0_0 = arith.constant 0 : index
    %0 = vector.load %arg1[%c0, %c0_0] : memref<64x16xbf16, #tpu.memory_space<vmem>>, vector<64x16xbf16>
    %c0_1 = arith.constant 0 : index
    %c0_2 = arith.constant 0 : index
    %1 = vector.load %arg2[%c0_1, %c0_2] : memref<16x128xbf16, #tpu.memory_space<vmem>>, vector<16x128xbf16>
    %cst = arith.constant dense<0.000000e+00> : vector<64x128xf32>
    %2 = tpu.matmul %0, %1, %cst {dimension_numbers = #tpu.dot_dimension_numbers<[1], [0], [0], [1], [0, 0, 1, 1], [], []>} : vector<64x16xbf16>, vector<16x128xbf16>, vector<64x128xf32> -> vector<64x128xf32>
    %c0_3 = arith.constant 0 : index
    %c0_4 = arith.constant 0 : index
    %3 = vector.load %arg3[%c0_3, %c0_4] : memref<1x128xf32, #tpu.memory_space<vmem>>, vector<1x128xf32>
    %4 = vector.broadcast %3 : vector<1x128xf32> to vector<64x128xf32>
    %5 = arith.addf %2, %4 : vector<64x128xf32>
    %c0_5 = arith.constant 0 : index
    %c0_6 = arith.constant 0 : index
    %6 = vector.load %arg4[%c0_5, %c0_6] : memref<64x128xf32, #tpu.memory_space<vmem>>, vector<64x128xf32>
    tpu.vector_store %arg4[%c0_5, %c0_6], %5 {strides = array<i32>} : memref<64x128xf32, #tpu.memory_space<vmem>>, vector<64x128xf32>,
    %c64_i32 = arith.constant 64 : i32
    %7 = arith.muli %arg0, %c64_i32 : i32
    %8 = tpu.iota {dimensions = array<i32: 0>} : vector<64x1xi32>
    %9 = vector.broadcast %7 : i32 to vector<64x1xi32>
    %10 = arith.addi %8, %9 : vector<64x1xi32>
    %c128_i32 = arith.constant 128 : i32
    %11 = vector.broadcast %c128_i32 : i32 to vector<64x1xi32>
    %12 = arith.cmpi slt, %10, %11 : vector<64x1xi32>
    %cst_7 = arith.constant 0.000000e+00 : f32
    %13 = vector.shape_cast %12 : vector<64x1xi1> to vector<64x1xi1>
    %14 = vector.broadcast %13 : vector<64x1xi1> to vector<64x128xi1>
    %15 = vector.broadcast %cst_7 : f32 to vector<64x128xf32>
    %16 = arith.select %14, %5, %15 : vector<64x128xi1>, vector<64x128xf32>
    %cst_8 = arith.constant dense<0.000000e+00> : vector<128xf32>
    %17 = vector.multi_reduction <add>, %16, %cst_8 [0] : vector<64x128xf32> to vector<128xf32>
    %18 = vector.shape_cast %17 : vector<128xf32> to vector<1x128xf32>
    %19 = arith.mulf %16, %16 : vector<64x128xf32>
    %cst_9 = arith.constant dense<0.000000e+00> : vector<128xf32>
    %20 = vector.multi_reduction <add>, %19, %cst_9 [0] : vector<64x128xf32> to vector<128xf32>
    %21 = vector.shape_cast %20 : vector<128xf32> to vector<1x128xf32>
    %22 = tpu.concatenate %18, %21 in 0 : vector<1x128xf32>, vector<1x128xf32> -> vector<2x128xf32>
    %c0_10 = arith.constant 0 : index
    %c0_11 = arith.constant 0 : index
    %c0_12 = arith.constant 0 : index
    %23 = vector.load %arg5[%c0_10, %c0_11, %c0_12] : memref<1x2x128xf32, #tpu.memory_space<vmem>>, vector<1x2x128xf32>
    %24 = vector.shape_cast %23 : vector<1x2x128xf32> to vector<2x128xf32>
    %25 = vector.shape_cast %22 : vector<2x128xf32> to vector<1x2x128xf32>
    tpu.vector_store %arg5[%c0_10, %c0_11, %c0_12], %25 {strides = array<i32>} : memref<1x2x128xf32, #tpu.memory_space<vmem>>, vector<1x2x128xf32>,
    return
  }
  func.func @transform_0(%arg0: i32) -> (i32, i32) {
    %c0_i32 = arith.constant 0 : i32
    %c0_i32_0 = arith.constant 0 : i32
    return %arg0, %c0_i32 : i32, i32
  }
  func.func @transform_1(%arg0: i32) -> (i32, i32) {
    %c0_i32 = arith.constant 0 : i32
    %c0_i32_0 = arith.constant 0 : i32
    %c0_i32_1 = arith.constant 0 : i32
    return %c0_i32, %c0_i32_0 : i32, i32
  }
  func.func @transform_2(%arg0: i32) -> (i32, i32) {
    %c0_i32 = arith.constant 0 : i32
    %c0_i32_0 = arith.constant 0 : i32
    %c0_i32_1 = arith.constant 0 : i32
    return %c0_i32, %c0_i32_0 : i32, i32
  }
  func.func @transform_3(%arg0: i32) -> (i32, i32) {
    %c0_i32 = arith.constant 0 : i32
    %c0_i32_0 = arith.constant 0 : i32
    return %arg0, %c0_i32 : i32, i32
  }
  func.func @transform_4(%arg0: i32) -> (i32, i32, i32) {
    %c0_i32 = arith.constant 0 : i32
    %c0_i32_0 = arith.constant 0 : i32
    %c0_i32_1 = arith.constant 0 : i32
    return %arg0, %c0_i32, %c0_i32_0 : i32, i32, i32
  }
}

module attributes {stable_mosaic.version = 11 : i64} {
  func.func @_bn_apply_kernel(%arg0: i32, %arg1: memref<64x128xf32, #tpu.memory_space<vmem>>, %arg2: memref<1x128xf32, #tpu.memory_space<vmem>>, %arg3: memref<1x128xf32, #tpu.memory_space<vmem>>, %arg4: memref<64x128xf32, #tpu.memory_space<vmem>>, %arg5: memref<64x128xf32, #tpu.memory_space<vmem>>) attributes {dimension_semantics = [#tpu.dimension_semantics<parallel>], iteration_bounds = array<i64: 2>, scalar_prefetch = 0 : i64, scratch_operands = 0 : i64, tpu.core_type = #tpu.core_type<tc>, window_params = [{transform_indices = @transform_0, window_bounds = array<i64: 64, 128>}, {pipeline_mode = #tpu.pipeline_mode<synchronous>, transform_indices = @transform_1, window_bounds = array<i64: 1, 128>}, {pipeline_mode = #tpu.pipeline_mode<synchronous>, transform_indices = @transform_2, window_bounds = array<i64: 1, 128>}, {transform_indices = @transform_3, window_bounds = array<i64: 64, 128>}, {transform_indices = @transform_4, window_bounds = array<i64: 64, 128>}]} {
    %c0 = arith.constant 0 : index
    %c0_0 = arith.constant 0 : index
    %0 = vector.load %arg1[%c0, %c0_0] : memref<64x128xf32, #tpu.memory_space<vmem>>, vector<64x128xf32>
    %c0_1 = arith.constant 0 : index
    %c0_2 = arith.constant 0 : index
    %1 = vector.load %arg2[%c0_1, %c0_2] : memref<1x128xf32, #tpu.memory_space<vmem>>, vector<1x128xf32>
    %2 = vector.broadcast %1 : vector<1x128xf32> to vector<64x128xf32>
    %3 = arith.mulf %0, %2 : vector<64x128xf32>
    %c0_3 = arith.constant 0 : index
    %c0_4 = arith.constant 0 : index
    %4 = vector.load %arg3[%c0_3, %c0_4] : memref<1x128xf32, #tpu.memory_space<vmem>>, vector<1x128xf32>
    %5 = vector.broadcast %4 : vector<1x128xf32> to vector<64x128xf32>
    %6 = arith.addf %3, %5 : vector<64x128xf32>
    %cst = arith.constant 0.000000e+00 : f32
    %7 = vector.broadcast %cst : f32 to vector<64x128xf32>
    %8 = arith.maximumf %6, %7 : vector<64x128xf32>
    %c0_5 = arith.constant 0 : index
    %c0_6 = arith.constant 0 : index
    %9 = vector.load %arg4[%c0_5, %c0_6] : memref<64x128xf32, #tpu.memory_space<vmem>>, vector<64x128xf32>
    %10 = arith.addf %8, %9 : vector<64x128xf32>
    %c0_7 = arith.constant 0 : index
    %c0_8 = arith.constant 0 : index
    %11 = vector.load %arg5[%c0_7, %c0_8] : memref<64x128xf32, #tpu.memory_space<vmem>>, vector<64x128xf32>
    tpu.vector_store %arg5[%c0_7, %c0_8], %10 {strides = array<i32>} : memref<64x128xf32, #tpu.memory_space<vmem>>, vector<64x128xf32>,
    return
  }
  func.func @transform_0(%arg0: i32) -> (i32, i32) {
    %c0_i32 = arith.constant 0 : i32
    %c0_i32_0 = arith.constant 0 : i32
    return %arg0, %c0_i32 : i32, i32
  }
  func.func @transform_1(%arg0: i32) -> (i32, i32) {
    %c0_i32 = arith.constant 0 : i32
    %c0_i32_0 = arith.constant 0 : i32
    %c0_i32_1 = arith.constant 0 : i32
    return %c0_i32, %c0_i32_0 : i32, i32
  }
  func.func @transform_2(%arg0: i32) -> (i32, i32) {
    %c0_i32 = arith.constant 0 : i32
    %c0_i32_0 = arith.constant 0 : i32
    %c0_i32_1 = arith.constant 0 : i32
    return %c0_i32, %c0_i32_0 : i32, i32
  }
  func.func @transform_3(%arg0: i32) -> (i32, i32) {
    %c0_i32 = arith.constant 0 : i32
    %c0_i32_0 = arith.constant 0 : i32
    return %arg0, %c0_i32 : i32, i32
  }
  func.func @transform_4(%arg0: i32) -> (i32, i32) {
    %c0_i32 = arith.constant 0 : i32
    %c0_i32_0 = arith.constant 0 : i32
    return %arg0, %c0_i32 : i32, i32
  }
}

module attributes {stable_mosaic.version = 11 : i64} {
  func.func @_matmul_stats_kernel(%arg0: i32, %arg1: memref<64x32xbf16, #tpu.memory_space<vmem>>, %arg2: memref<32x128xbf16, #tpu.memory_space<vmem>>, %arg3: memref<1x128xf32, #tpu.memory_space<vmem>>, %arg4: memref<64x128xf32, #tpu.memory_space<vmem>>, %arg5: memref<1x2x128xf32, #tpu.memory_space<vmem>>) attributes {dimension_semantics = [#tpu.dimension_semantics<parallel>], iteration_bounds = array<i64: 2>, scalar_prefetch = 0 : i64, scratch_operands = 0 : i64, tpu.core_type = #tpu.core_type<tc>, window_params = [{transform_indices = @transform_0, window_bounds = array<i64: 64, 32>}, {pipeline_mode = #tpu.pipeline_mode<synchronous>, transform_indices = @transform_1, window_bounds = array<i64: 32, 128>}, {pipeline_mode = #tpu.pipeline_mode<synchronous>, transform_indices = @transform_2, window_bounds = array<i64: 1, 128>}, {transform_indices = @transform_3, window_bounds = array<i64: 64, 128>}, {transform_indices = @transform_4, window_bounds = array<i64: 1, 2, 128>}]} {
    %c0 = arith.constant 0 : index
    %c0_0 = arith.constant 0 : index
    %0 = vector.load %arg1[%c0, %c0_0] : memref<64x32xbf16, #tpu.memory_space<vmem>>, vector<64x32xbf16>
    %c0_1 = arith.constant 0 : index
    %c0_2 = arith.constant 0 : index
    %1 = vector.load %arg2[%c0_1, %c0_2] : memref<32x128xbf16, #tpu.memory_space<vmem>>, vector<32x128xbf16>
    %cst = arith.constant dense<0.000000e+00> : vector<64x128xf32>
    %2 = tpu.matmul %0, %1, %cst {dimension_numbers = #tpu.dot_dimension_numbers<[1], [0], [0], [1], [0, 0, 1, 1], [], []>} : vector<64x32xbf16>, vector<32x128xbf16>, vector<64x128xf32> -> vector<64x128xf32>
    %c0_3 = arith.constant 0 : index
    %c0_4 = arith.constant 0 : index
    %3 = vector.load %arg3[%c0_3, %c0_4] : memref<1x128xf32, #tpu.memory_space<vmem>>, vector<1x128xf32>
    %4 = vector.broadcast %3 : vector<1x128xf32> to vector<64x128xf32>
    %5 = arith.addf %2, %4 : vector<64x128xf32>
    %c0_5 = arith.constant 0 : index
    %c0_6 = arith.constant 0 : index
    %6 = vector.load %arg4[%c0_5, %c0_6] : memref<64x128xf32, #tpu.memory_space<vmem>>, vector<64x128xf32>
    tpu.vector_store %arg4[%c0_5, %c0_6], %5 {strides = array<i32>} : memref<64x128xf32, #tpu.memory_space<vmem>>, vector<64x128xf32>,
    %c64_i32 = arith.constant 64 : i32
    %7 = arith.muli %arg0, %c64_i32 : i32
    %8 = tpu.iota {dimensions = array<i32: 0>} : vector<64x1xi32>
    %9 = vector.broadcast %7 : i32 to vector<64x1xi32>
    %10 = arith.addi %8, %9 : vector<64x1xi32>
    %c128_i32 = arith.constant 128 : i32
    %11 = vector.broadcast %c128_i32 : i32 to vector<64x1xi32>
    %12 = arith.cmpi slt, %10, %11 : vector<64x1xi32>
    %cst_7 = arith.constant 0.000000e+00 : f32
    %13 = vector.shape_cast %12 : vector<64x1xi1> to vector<64x1xi1>
    %14 = vector.broadcast %13 : vector<64x1xi1> to vector<64x128xi1>
    %15 = vector.broadcast %cst_7 : f32 to vector<64x128xf32>
    %16 = arith.select %14, %5, %15 : vector<64x128xi1>, vector<64x128xf32>
    %cst_8 = arith.constant dense<0.000000e+00> : vector<128xf32>
    %17 = vector.multi_reduction <add>, %16, %cst_8 [0] : vector<64x128xf32> to vector<128xf32>
    %18 = vector.shape_cast %17 : vector<128xf32> to vector<1x128xf32>
    %19 = arith.mulf %16, %16 : vector<64x128xf32>
    %cst_9 = arith.constant dense<0.000000e+00> : vector<128xf32>
    %20 = vector.multi_reduction <add>, %19, %cst_9 [0] : vector<64x128xf32> to vector<128xf32>
    %21 = vector.shape_cast %20 : vector<128xf32> to vector<1x128xf32>
    %22 = tpu.concatenate %18, %21 in 0 : vector<1x128xf32>, vector<1x128xf32> -> vector<2x128xf32>
    %c0_10 = arith.constant 0 : index
    %c0_11 = arith.constant 0 : index
    %c0_12 = arith.constant 0 : index
    %23 = vector.load %arg5[%c0_10, %c0_11, %c0_12] : memref<1x2x128xf32, #tpu.memory_space<vmem>>, vector<1x2x128xf32>
    %24 = vector.shape_cast %23 : vector<1x2x128xf32> to vector<2x128xf32>
    %25 = vector.shape_cast %22 : vector<2x128xf32> to vector<1x2x128xf32>
    tpu.vector_store %arg5[%c0_10, %c0_11, %c0_12], %25 {strides = array<i32>} : memref<1x2x128xf32, #tpu.memory_space<vmem>>, vector<1x2x128xf32>,
    return
  }
  func.func @transform_0(%arg0: i32) -> (i32, i32) {
    %c0_i32 = arith.constant 0 : i32
    %c0_i32_0 = arith.constant 0 : i32
    return %arg0, %c0_i32 : i32, i32
  }
  func.func @transform_1(%arg0: i32) -> (i32, i32) {
    %c0_i32 = arith.constant 0 : i32
    %c0_i32_0 = arith.constant 0 : i32
    %c0_i32_1 = arith.constant 0 : i32
    return %c0_i32, %c0_i32_0 : i32, i32
  }
  func.func @transform_2(%arg0: i32) -> (i32, i32) {
    %c0_i32 = arith.constant 0 : i32
    %c0_i32_0 = arith.constant 0 : i32
    %c0_i32_1 = arith.constant 0 : i32
    return %c0_i32, %c0_i32_0 : i32, i32
  }
  func.func @transform_3(%arg0: i32) -> (i32, i32) {
    %c0_i32 = arith.constant 0 : i32
    %c0_i32_0 = arith.constant 0 : i32
    return %arg0, %c0_i32 : i32, i32
  }
  func.func @transform_4(%arg0: i32) -> (i32, i32, i32) {
    %c0_i32 = arith.constant 0 : i32
    %c0_i32_0 = arith.constant 0 : i32
    %c0_i32_1 = arith.constant 0 : i32
    return %arg0, %c0_i32, %c0_i32_0 : i32, i32, i32
  }
}

module attributes {stable_mosaic.version = 11 : i64} {
  func.func @_bn_apply_kernel(%arg0: i32, %arg1: memref<64x128xf32, #tpu.memory_space<vmem>>, %arg2: memref<1x128xf32, #tpu.memory_space<vmem>>, %arg3: memref<1x128xf32, #tpu.memory_space<vmem>>, %arg4: memref<64x128xf32, #tpu.memory_space<vmem>>) attributes {dimension_semantics = [#tpu.dimension_semantics<parallel>], iteration_bounds = array<i64: 2>, scalar_prefetch = 0 : i64, scratch_operands = 0 : i64, tpu.core_type = #tpu.core_type<tc>, window_params = [{transform_indices = @transform_0, window_bounds = array<i64: 64, 128>}, {pipeline_mode = #tpu.pipeline_mode<synchronous>, transform_indices = @transform_1, window_bounds = array<i64: 1, 128>}, {pipeline_mode = #tpu.pipeline_mode<synchronous>, transform_indices = @transform_2, window_bounds = array<i64: 1, 128>}, {transform_indices = @transform_3, window_bounds = array<i64: 64, 128>}]} {
    %c0 = arith.constant 0 : index
    %c0_0 = arith.constant 0 : index
    %0 = vector.load %arg1[%c0, %c0_0] : memref<64x128xf32, #tpu.memory_space<vmem>>, vector<64x128xf32>
    %c0_1 = arith.constant 0 : index
    %c0_2 = arith.constant 0 : index
    %1 = vector.load %arg2[%c0_1, %c0_2] : memref<1x128xf32, #tpu.memory_space<vmem>>, vector<1x128xf32>
    %2 = vector.broadcast %1 : vector<1x128xf32> to vector<64x128xf32>
    %3 = arith.mulf %0, %2 : vector<64x128xf32>
    %c0_3 = arith.constant 0 : index
    %c0_4 = arith.constant 0 : index
    %4 = vector.load %arg3[%c0_3, %c0_4] : memref<1x128xf32, #tpu.memory_space<vmem>>, vector<1x128xf32>
    %5 = vector.broadcast %4 : vector<1x128xf32> to vector<64x128xf32>
    %6 = arith.addf %3, %5 : vector<64x128xf32>
    %c0_5 = arith.constant 0 : index
    %c0_6 = arith.constant 0 : index
    %7 = vector.load %arg4[%c0_5, %c0_6] : memref<64x128xf32, #tpu.memory_space<vmem>>, vector<64x128xf32>
    tpu.vector_store %arg4[%c0_5, %c0_6], %6 {strides = array<i32>} : memref<64x128xf32, #tpu.memory_space<vmem>>, vector<64x128xf32>,
    return
  }
  func.func @transform_0(%arg0: i32) -> (i32, i32) {
    %c0_i32 = arith.constant 0 : i32
    %c0_i32_0 = arith.constant 0 : i32
    return %arg0, %c0_i32 : i32, i32
  }
  func.func @transform_1(%arg0: i32) -> (i32, i32) {
    %c0_i32 = arith.constant 0 : i32
    %c0_i32_0 = arith.constant 0 : i32
    %c0_i32_1 = arith.constant 0 : i32
    return %c0_i32, %c0_i32_0 : i32, i32
  }
  func.func @transform_2(%arg0: i32) -> (i32, i32) {
    %c0_i32 = arith.constant 0 : i32
    %c0_i32_0 = arith.constant 0 : i32
    %c0_i32_1 = arith.constant 0 : i32
    return %c0_i32, %c0_i32_0 : i32, i32
  }
  func.func @transform_3(%arg0: i32) -> (i32, i32) {
    %c0_i32 = arith.constant 0 : i32
    %c0_i32_0 = arith.constant 0 : i32
    return %arg0, %c0_i32 : i32, i32
  }
}

</mosaic_0001>

<bundles_post_ra>
// kernel: block_forward.13
= control target key start
LH: loop header
LB: loop body
LE: loop exit
PB: predicated region body
PF: predicated region fallthrough
CT: control target
= control target key end

     0   :  { %s333_s12 = smov 0   ;;  %s356_s0 = inlined_call_operand.vmem [shape: f32[128,128], index: 0, kind: input, shape index: {}]   ;;  %s357_s1 = inlined_call_operand.vmem [shape: f32[1,128], index: 1, kind: input, shape index: {}]   ;;  %s358_s2 = inlined_call_operand.vmem [shape: f32[1,128], index: 2, kind: input, shape index: {}]   ;;  %s359_s3 = inlined_call_operand.vmem [shape: f32[128,128], index: 3, kind: output, shape index: {}]  }
   0x1 LB: > { %s284_s13 = sadd.s32 4294967295, %s311_s12   ;;  %p288_p0 = scmp.ge.s32.totalorder %s311_s12, 1  ;;  %s311_s12 = sphi %s333_s12, %s13_s12  }
   0x2   : > { %p138_p1 = scmp.lt.s32.totalorder %s311_s12, 3 }
   0x4   : > { %p139_p2 = pnand %p288_p0, %p138_p1 }
   0x5   : > { %s289_s14 = sshll.u32 (!%p139_p2), %s284_s13, 3  ;;  %v293_v0 = vld [vmem:[%s357_s1] ss:$0 sm:$0xff] (!%p139_p2) }
   0x6   : > { %142 = sbr.rel (%p139_p2) target bundleno = 27 (0x1b), region = 32  ;;  %p163_p3 = scmp.lt.s32.totalorder (!%p139_p2), %s289_s14, 15  ;;  %v294_v1 = vld [vmem:[%s358_s2] ss:$0 sm:$0xff] (!%p139_p2) }
   0xd   : > { %s361_s14 = smov (!%p163_p3, %s289_s14), 15 }
   0xe   : > { %s290_s15 = sshll.u32 %s361_s14, 3 }
   0xf   : > { %s166_s20 = scalar_lea.vmem %s356_s0, %s290_s15  ;;  %s172_s25 = scalar_lea.vmem %s359_s3, %s290_s15 }
  0x10   : > { %v174_v2 = vld [vmem:[%s166_s20] sm:$0xff]  ;;  %v175_v3 = vld [vmem:[%s166_s20 + $0x8] sm:$0xff]  ;;  %v176_v4 = vld [vmem:[%s166_s20 + $0x10] sm:$0xff] }
  0x11   : > { %v189_v5 = vmul.f32 %v293_v0, %v174_v2  ;;  %v190_v6 = vmul.f32 %v293_v0, %v175_v3  ;;  %v191_v7 = vmul.f32 %v293_v0, %v176_v4  ;;  %v177_v8 = vld [vmem:[%s166_s20 + $0x18] sm:$0xff]  ;;  %v178_v9 = vld [vmem:[%s166_s20 + $0x20] sm:$0xff]  ;;  %v179_v10 = vld [vmem:[%s166_s20 + $0x28] sm:$0xff] }
  0x12   : > { %v192_v11 = vmul.f32 %v293_v0, %v177_v8  ;;  %v193_v12 = vmul.f32 %v293_v0, %v178_v9  ;;  %v194_v13 = vmul.f32 %v293_v0, %v179_v10  ;;  %v180_v14 = vld [vmem:[%s166_s20 + $0x30] sm:$0xff]  ;;  %v181_v15 = vld [vmem:[%s166_s20 + $0x38] sm:$0xff] }
  0x13   : > { %v204_v16 = vadd.f32 %v294_v1, %v189_v5  ;;  %v205_v17 = vadd.f32 %v294_v1, %v190_v6  ;;  %v206_v18 = vadd.f32 %v294_v1, %v191_v7  ;;  %v195_v19 = vmul.f32 %v293_v0, %v180_v14 }
  0x14   : > { %v207_v20 = vadd.f32 %v294_v1, %v192_v11  ;;  %v208_v21 = vadd.f32 %v294_v1, %v193_v12  ;;  %v209_v22 = vadd.f32 %v294_v1, %v194_v13  ;;  %v196_v23 = vmul.f32 %v293_v0, %v181_v15 }
  0x15   : > { %v212_v24 = vmax.f32 %v204_v16, 0.0  ;;  %v213_v25 = vmax.f32 %v205_v17, 0.0  ;;  %v214_v26 = vmax.f32 %v206_v18, 0.0  ;;  %v210_v27 = vadd.f32 %v294_v1, %v195_v19 }
  0x16   : > { %v215_v28 = vmax.f32 %v207_v20, 0.0  ;;  %v216_v29 = vmax.f32 %v208_v21, 0.0  ;;  %v217_v30 = vmax.f32 %v209_v22, 0.0  ;;  %v211_v31 = vadd.f32 %v294_v1, %v196_v23 }
  0x17   : > { %220 = vst [vmem:[%s172_s25] sm:$0xff] %v212_v24  ;;  %221 = vst [vmem:[%s172_s25 + $0x8] sm:$0xff] %v213_v25  ;;  %v218_v32 = vmax.f32 %v210_v27, 0.0 }
  0x18   : > { %222 = vst [vmem:[%s172_s25 + $0x10] sm:$0xff] %v214_v26  ;;  %223 = vst [vmem:[%s172_s25 + $0x18] sm:$0xff] %v215_v28  ;;  %v219_v33 = vmax.f32 %v211_v31, 0.0 }
  0x19   : > { %224 = vst [vmem:[%s172_s25 + $0x20] sm:$0xff] %v216_v29  ;;  %225 = vst [vmem:[%s172_s25 + $0x28] sm:$0xff] %v217_v30 }
  0x1a   : > { %226 = vst [vmem:[%s172_s25 + $0x30] sm:$0xff] %v218_v32  ;;  %227 = vst [vmem:[%s172_s25 + $0x38] sm:$0xff] %v219_v33 }
  0x1b PF: > { %s13_s12 = sadd.s32 1, %s311_s12  }
  0x1c   : > { %p10_p4 = scmp.ge.s32.totalorder %s13_s12, 4  }
  0x1e   :  { %12 = sbr.rel (!%p10_p4) target bundleno = 1 (0x1), region = 62 }

// kernel: block_forward.12
= control target key start
LH: loop header
LB: loop body
LE: loop exit
PB: predicated region body
PF: predicated region fallthrough
CT: control target
= control target key end

     0   :  { %s633_s15 = smov 0   ;;  %s688_s0 = inlined_call_operand.vmem [shape: bf16[128,48], index: 0, kind: input, shape index: {}]   ;;  %s689_s1 = inlined_call_operand.vmem [shape: bf16[48,128], index: 1, kind: input, shape index: {}]   ;;  %s690_s2 = inlined_call_operand.vmem [shape: f32[1,128], index: 2, kind: input, shape index: {}]   ;;  %s691_s3 = inlined_call_operand.vmem [shape: f32[128,128], index: 3, kind: output, shape index: {0}]   ;;  %s692_s4 = inlined_call_operand.vmem [shape: f32[2,2,128], index: 4, kind: output, shape index: {1}]  }
   0x1 LB: > { %s639_s16 = sadd.s32 4294967295, %s606_s15   ;;  %p537_p0 = scmp.ge.s32.totalorder %s606_s15, 1  ;;  %s606_s15 = sphi %s633_s15, %s15_s15  }
   0x2   : > { %p166_p1 = scmp.lt.s32.totalorder %s606_s15, 3 }
   0x4   : > { %p167_p2 = pnand %p537_p0, %p166_p1 }
   0x5   : > { %v593_v0 = vld [vmem:[%s689_s1] sm:$0xff] (!%p167_p2)   ;;  %s538_s19 = sshll.u32 (!%p167_p2), %s639_s16, 3  ;;  %v594_v1 = vld [vmem:[%s689_s1 + $0x8] sm:$0xff] (!%p167_p2)   ;;  %v595_v2 = vld [vmem:[%s689_s1 + $0x10] sm:$0xff] (!%p167_p2)   ;;  %vm272_vm0 = vcmask (!%p167_p2), 392192   ;;  %v359_v7 = vlaneseq (!%p167_p2)  ;;  %s555_s28 = sshll.u32 (!%p167_p2), %s639_s16, 6 }
   0x6   : > { %170 = sbr.rel (%p167_p2) target bundleno = 266 (0x10a), region = 32  ;;  %p197_p3 = scmp.lt.s32.totalorder (!%p167_p2), %s538_s19, 15  ;;  %565 = vmatprep.subr.bf16.mxu0 (!%p167_p2), %v593_v0  ;;  %579 = vmatprep.subr.bf16.mxu1 (!%p167_p2), %v593_v0  ;;  %v368_v9 = vstv (!%p167_p2), %s555_s28  ;;  %v543_v15 = vld [vmem:[%s690_s2] ss:$0 sm:$0xff] (!%p167_p2)  ;;  %vm443_vm9 = vcmask (!%p167_p2), 1040384  }
   0x7   : > { %566 = vmatpush3.bf16.msra.mxu0 (!%p167_p2), %v593_v0  ;;  %582 = vmatpush3.bf16.msra.mxu1 (!%p167_p2), %v593_v0  ;;  %v360_v8 = vshrl.u32 (!%p167_p2), %v359_v7, 7  ;;  %p208_p4 = scmp.lt.s32.totalorder (!%p167_p2), %s639_s16, 1 }
   0x8   : > { %567 = vmatprep.subr.bf16.mxu0 (!%p167_p2), %v594_v1  ;;  %580 = vmatprep.subr.bf16.mxu1 (!%p167_p2), %v594_v1 }
   0x9   : > { %v362_v10 = vadd.s32 (!%p167_p2), 16, %v360_v8  ;;  %v361_v11 = vadd.s32 (!%p167_p2), 8, %v360_v8  ;;  %v369_v12 = vadd.s32 (!%p167_p2), %v368_v9, %v360_v8  ;;  %v363_v13 = vadd.s32 (!%p167_p2), 24, %v360_v8 }
   0xa   : > { %v364_v14 = vadd.s32 (!%p167_p2), 32, %v360_v8  ;;  %v365_v26 = vadd.s32 (!%p167_p2), 40, %v360_v8  ;;  %v366_v29 = vadd.s32 (!%p167_p2), 48, %v360_v8  ;;  %v367_v38 = vadd.s32 (!%p167_p2), 56, %v360_v8 }
   0xb   : > { %568 = vmatpush3.bf16.msra.mxu0 (!%p167_p2), %v594_v1  ;;  %583 = vmatpush3.bf16.msra.mxu1 (!%p167_p2), %v594_v1  ;;  %v371_v16 = vadd.s32 (!%p167_p2), %v368_v9, %v362_v10  ;;  %v370_v17 = vadd.s32 (!%p167_p2), %v368_v9, %v361_v11  ;;  %vm377_vm1 = vcmp.lt.s32.totalorder (!%p167_p2), %v369_v12, 128  ;;  %v372_v19 = vadd.s32 (!%p167_p2), %v368_v9, %v363_v13 }
   0xc   : > { %569 = vmatprep.subr.bf16.mxu0 (!%p167_p2), %v595_v2  ;;  %581 = vmatprep.subr.bf16.mxu1 (!%p167_p2), %v595_v2  ;;  %v373_v25 = vadd.s32 (!%p167_p2), %v368_v9, %v364_v14  ;;  %v374_v39 = vadd.s32 (!%p167_p2), %v368_v9, %v365_v26  ;;  %v375_v42 = vadd.s32 (!%p167_p2), %v368_v9, %v366_v29 }
   0xd   : > { %s694_s19 = smov (!%p197_p3, %s538_s19), 15  ;;  %vm379_vm2 = vcmp.lt.s32.totalorder %v371_v16, 128  ;;  %vm378_vm3 = vcmp.lt.s32.totalorder %v370_v17, 128  ;;  %vm380_vm4 = vcmp.lt.s32.totalorder %v372_v19, 128  ;;  %v376_v49 = vadd.s32 %v368_v9, %v367_v38  ;;  %s696_s16 = smov (!%p208_p4, %s639_s16), 1 }
   0xe   : > { %s539_s24 = sshll.u32 %s694_s19, 2  ;;  %s541_s29 = sshll.u32 %s694_s19, 3  ;;  %vm381_vm5 = vcmp.lt.s32.totalorder %v373_v25, 128  ;;  %vm382_vm6 = vcmp.lt.s32.totalorder %v374_v39, 128  ;;  %vm383_vm7 = vcmp.lt.s32.totalorder %v375_v42, 128 }
   0xf   : > { %s200_s27 = scalar_lea.vmem %s688_s0, %s539_s24  ;;  %570 = vmatpush3.bf16.msra.mxu0 %v595_v2  ;;  %584 = vmatpush3.bf16.msra.mxu1 %v595_v2  ;;  %s667_s8 = scalar_lea.vmem %s691_s3, %s541_s29  ;;  %vm384_vm8 = vcmp.lt.s32.totalorder %v376_v49, 128 }
  0x10   : > { %v596_v3 = vld [vmem:[%s200_s27] sm:$0xff]   ;;  %v597_v4 = vld [vmem:[%s200_s27 + $0x8] sm:$0xff]   ;;  %v598_v5 = vld [vmem:[%s200_s27 + $0x10] sm:$0xff]   ;;  %s542_s9 = sshll.u32 %s696_s16, 1 }
  0x11   : > { %571 = vmatprep.mubr.msk.bf16.mxu0 %vm272_vm0, %v596_v3  ;;  %v599_v6 = vld [vmem:[%s200_s27 + $0x18] sm:$0xff]   ;;  %575 = vmatprep.mubr.msk.bf16.mxu1 %vm272_vm0, %v598_v5  ;;  %s211_s12 = scalar_lea.vmem %s692_s4, %s542_s9 }
  0x12   : > { %572 = vmatmul.mubr.msk.bf16.vlgmr.msra.gmra.mrb[0].mxu0 %vm272_vm0, %v597_v4  ;;  %576 = vmatmul.mubr.msk.bf16.vlgmr.msra.gmra.mrb[0].mxu1 %vm272_vm0, %v599_v6 }
  0xe5   : > { %v573_v18 = vpop.f32.mrb[0].mxu0  ;;  %v577_v20 = vpop.f32.mrb[0].mxu1 }
  0xe6   : > { %v328_v21 = vadd.f32 %v573_v18, %v543_v15  ;;  %v319_v22 = vpop.f32.mrb[1].mxu0  ;;  %v344_v23 = vadd.f32 %v577_v20, %v543_v15  ;;  %v335_v24 = vpop.f32.mrb[1].mxu1 }
  0xe7   : > { %v320_v27 = vadd.f32 %v543_v15, %v319_v22  ;;  %v574_v28 = vpop.f32.mrb[2].mxu0  ;;  %v336_v30 = vadd.f32 %v543_v15, %v335_v24  ;;  %v578_v31 = vpop.f32.mrb[2].mxu1 }
  0xe8   : > { %352 = vst [vmem:[%s667_s8 + $0x10] sm:$0xff] %v328_v21  ;;  %v331_v32 = vadd.f32 %v574_v28, %v543_v15  ;;  %v322_v33 = vpop.f32.mrb[3].mxu0  ;;  %356 = vst [vmem:[%s667_s8 + $0x30] sm:$0xff] %v344_v23  ;;  %v347_v34 = vadd.f32 %v578_v31, %v543_v15  ;;  %v338_v35 = vpop.f32.mrb[3].mxu1  ;;  %v403_v40 = vsel %vm379_vm2, %v328_v21, 0.0  ;;  %v407_v60 = vsel %vm383_vm7, %v344_v23, 0.0 }
  0xe9   : > { %350 = vst [vmem:[%s667_s8] sm:$0xff] %v320_v27  ;;  %v401_v36 = vsel %vm377_vm1, %v320_v27, 0.0  ;;  %v323_v37 = vadd.f32 %v543_v15, %v322_v33  ;;  %354 = vst [vmem:[%s667_s8 + $0x20] sm:$0xff] %v336_v30  ;;  %v339_v46 = vadd.f32 %v543_v15, %v338_v35  ;;  %v405_v48 = vsel %vm381_vm5, %v336_v30, 0.0 }
  0xea   : > { %353 = vst [vmem:[%s667_s8 + $0x18] sm:$0xff] %v331_v32  ;;  %357 = vst [vmem:[%s667_s8 + $0x38] sm:$0xff] %v347_v34  ;;  %v422_v43 = vmul.f32 %v401_v36, %v401_v36  ;;  %v404_v47 = vsel %vm380_vm4, %v331_v32, 0.0  ;;  %v424_v50 = vmul.f32 %v403_v40, %v403_v40  ;;  %v426_v56 = vmul.f32 %v405_v48, %v405_v48 }
  0xeb   : > { %351 = vst [vmem:[%s667_s8 + $0x8] sm:$0xff] %v323_v37  ;;  %v402_v41 = vsel %vm378_vm3, %v323_v37, 0.0  ;;  %355 = vst [vmem:[%s667_s8 + $0x28] sm:$0xff] %v339_v46  ;;  %v425_v53 = vmul.f32 %v404_v47, %v404_v47  ;;  %v406_v57 = vsel %vm382_vm6, %v339_v46, 0.0  ;;  %v408_v0 = vsel %vm384_vm8, %v347_v34, 0.0 }
  0xec   : > { %v409_v44 = vadd.f32 %v402_v41, %v401_v36  ;;  %v423_v45 = vmul.f32 %v402_v41, %v402_v41  ;;  %v427_v63 = vmul.f32 %v406_v57, %v406_v57  ;;  %v428_v1 = vmul.f32 %v407_v60, %v407_v60 }
  0xed   : > { %v429_v4 = vmul.f32 %v408_v0, %v408_v0 }
  0xee   : > { %v410_v51 = vadd.f32 %v409_v44, %v403_v40  ;;  %v430_v52 = vadd.f32 %v423_v45, %v422_v43 }
  0xf0   : > { %v431_v54 = vadd.f32 %v430_v52, %v424_v50  ;;  %v411_v55 = vadd.f32 %v410_v51, %v404_v47 }
  0xf2   : > { %v412_v58 = vadd.f32 %v411_v55, %v405_v48  ;;  %v432_v59 = vadd.f32 %v431_v54, %v425_v53 }
  0xf4   : > { %v433_v61 = vadd.f32 %v432_v59, %v426_v56  ;;  %v413_v62 = vadd.f32 %v412_v58, %v406_v57 }
  0xf6   : > { %v414_v2 = vadd.f32 %v413_v62, %v407_v60  ;;  %v434_v3 = vadd.f32 %v433_v61, %v427_v63 }
  0xf8   : > { %v415_v5 = vadd.f32 %v414_v2, %v408_v0  ;;  %v435_v6 = vadd.f32 %v434_v3, %v428_v1 }
  0xfa   : > { %v416_v7 = vrot.slane %v415_v5, 4  ;;  %v436_v8 = vadd.f32 %v435_v6, %v429_v4 }
  0xfc   : > { %v417_v9 = vadd.f32 %v416_v7, %v415_v5  ;;  %v437_v10 = vrot.slane %v436_v8, 4 }
  0xfe   : > { %v418_v11 = vrot.slane %v417_v9, 2  ;;  %v438_v12 = vadd.f32 %v437_v10, %v436_v8 }
 0x100   : > { %v419_v13 = vadd.f32 %v418_v11, %v417_v9  ;;  %v439_v14 = vrot.slane %v438_v12, 2 }
 0x102   : > { %v420_v15 = vrot.slane %v419_v13, 1  ;;  %v440_v16 = vadd.f32 %v439_v14, %v438_v12 }
 0x104   : > { %v441_v17 = vrot.slane %v440_v16, 1  ;;  %v421_v18 = vadd.f32 %v420_v15, %v419_v13 }
 0x106   : > { %v442_v19 = vadd.f32 %v441_v17, %v440_v16 }
 0x108   : > { %v444_v20 = vsel %vm443_vm9, %v421_v18, %v442_v19 }
 0x109   : > { %445 = vst [vmem:[%s211_s12] sm:$0x3] %v444_v20 }
 0x10a PF: > { %s15_s15 = sadd.s32 1, %s606_s15  }
 0x10b   : > { %p12_p5 = scmp.ge.s32.totalorder %s15_s15, 4  }
 0x10d   :  { %14 = sbr.rel (!%p12_p5) target bundleno = 1 (0x1), region = 74 }

// kernel: block_forward.16
= control target key start
LH: loop header
LB: loop body
LE: loop exit
PB: predicated region body
PF: predicated region fallthrough
CT: control target
= control target key end

     0   :  { %s663_s15 = smov 0   ;;  %s728_s0 = inlined_call_operand.vmem [shape: bf16[128,80], index: 0, kind: input, shape index: {}]   ;;  %s729_s1 = inlined_call_operand.vmem [shape: bf16[80,128], index: 1, kind: input, shape index: {}]   ;;  %s730_s2 = inlined_call_operand.vmem [shape: f32[1,128], index: 2, kind: input, shape index: {}]   ;;  %s731_s3 = inlined_call_operand.vmem [shape: f32[128,128], index: 3, kind: output, shape index: {0}]   ;;  %s732_s4 = inlined_call_operand.vmem [shape: f32[2,2,128], index: 4, kind: output, shape index: {1}]  }
   0x1 LB: > { %s669_s16 = sadd.s32 4294967295, %s636_s15   ;;  %p553_p0 = scmp.ge.s32.totalorder %s636_s15, 1  ;;  %s636_s15 = sphi %s663_s15, %s15_s15  }
   0x2   : > { %p166_p1 = scmp.lt.s32.totalorder %s636_s15, 3 }
   0x4   : > { %p167_p2 = pnand %p553_p0, %p166_p1 }
   0x5   : > { %v621_v0 = vld [vmem:[%s729_s1] sm:$0xff] (!%p167_p2)   ;;  %s554_s19 = sshll.u32 (!%p167_p2), %s669_s16, 3  ;;  %v622_v1 = vld [vmem:[%s729_s1 + $0x8] sm:$0xff] (!%p167_p2)   ;;  %v623_v2 = vld [vmem:[%s729_s1 + $0x10] sm:$0xff] (!%p167_p2)   ;;  %vm288_vm0 = vcmask (!%p167_p2), 654336   ;;  %v375_v9 = vlaneseq (!%p167_p2)  ;;  %s573_s6 = sshll.u32 (!%p167_p2), %s669_s16, 6 }
   0x6   : > { %170 = sbr.rel (%p167_p2) target bundleno = 274 (0x112), region = 32  ;;  %p197_p3 = scmp.lt.s32.totalorder (!%p167_p2), %s554_s19, 15  ;;  %585 = vmatprep.subr.bf16.mxu0 (!%p167_p2), %v621_v0  ;;  %603 = vmatprep.subr.bf16.mxu1 (!%p167_p2), %v621_v0  ;;  %v624_v4 = vld [vmem:[%s729_s1 + $0x18] sm:$0xff] (!%p167_p2)   ;;  %v625_v6 = vld [vmem:[%s729_s1 + $0x20] sm:$0xff] (!%p167_p2)   ;;  %v384_v11 = vstv (!%p167_p2), %s573_s6  ;;  %vm459_vm9 = vcmask (!%p167_p2), 1040384  }
   0x7   : > { %586 = vmatpush3.bf16.msra.mxu0 (!%p167_p2), %v621_v0  ;;  %608 = vmatpush3.bf16.msra.mxu1 (!%p167_p2), %v621_v0  ;;  %v376_v10 = vshrl.u32 (!%p167_p2), %v375_v9, 7  ;;  %v559_v17 = vld [vmem:[%s730_s2] ss:$0 sm:$0xff] (!%p167_p2)  ;;  %p208_p4 = scmp.lt.s32.totalorder (!%p167_p2), %s669_s16, 1 }
   0x8   : > { %587 = vmatprep.subr.bf16.mxu0 (!%p167_p2), %v622_v1  ;;  %604 = vmatprep.subr.bf16.mxu1 (!%p167_p2), %v622_v1 }
   0x9   : > { %v378_v12 = vadd.s32 (!%p167_p2), 16, %v376_v10  ;;  %v377_v13 = vadd.s32 (!%p167_p2), 8, %v376_v10  ;;  %v385_v14 = vadd.s32 (!%p167_p2), %v384_v11, %v376_v10  ;;  %v379_v15 = vadd.s32 (!%p167_p2), 24, %v376_v10 }
   0xa   : > { %v380_v16 = vadd.s32 (!%p167_p2), 32, %v376_v10  ;;  %v381_v28 = vadd.s32 (!%p167_p2), 40, %v376_v10  ;;  %v382_v31 = vadd.s32 (!%p167_p2), 48, %v376_v10  ;;  %v383_v40 = vadd.s32 (!%p167_p2), 56, %v376_v10 }
   0xb   : > { %588 = vmatpush3.bf16.msra.mxu0 (!%p167_p2), %v622_v1  ;;  %609 = vmatpush3.bf16.msra.mxu1 (!%p167_p2), %v622_v1  ;;  %v387_v18 = vadd.s32 (!%p167_p2), %v384_v11, %v378_v12  ;;  %v386_v19 = vadd.s32 (!%p167_p2), %v384_v11, %v377_v13  ;;  %vm393_vm1 = vcmp.lt.s32.totalorder (!%p167_p2), %v385_v14, 128  ;;  %v388_v21 = vadd.s32 (!%p167_p2), %v384_v11, %v379_v15 }
   0xc   : > { %589 = vmatprep.subr.bf16.mxu0 (!%p167_p2), %v623_v2  ;;  %605 = vmatprep.subr.bf16.mxu1 (!%p167_p2), %v623_v2  ;;  %v389_v27 = vadd.s32 (!%p167_p2), %v384_v11, %v380_v16  ;;  %v390_v41 = vadd.s32 (!%p167_p2), %v384_v11, %v381_v28  ;;  %v391_v44 = vadd.s32 (!%p167_p2), %v384_v11, %v382_v31 }
   0xd   : > { %s734_s19 = smov (!%p197_p3, %s554_s19), 15  ;;  %vm395_vm2 = vcmp.lt.s32.totalorder %v387_v18, 128  ;;  %vm394_vm3 = vcmp.lt.s32.totalorder %v386_v19, 128  ;;  %vm396_vm4 = vcmp.lt.s32.totalorder %v388_v21, 128  ;;  %v392_v51 = vadd.s32 %v384_v11, %v383_v40  ;;  %s736_s16 = smov (!%p208_p4, %s669_s16), 1 }
   0xe   : > { %s555_s24 = sshll.u32 %s734_s19, 2  ;;  %s557_s7 = sshll.u32 %s734_s19, 3  ;;  %vm397_vm5 = vcmp.lt.s32.totalorder %v389_v27, 128  ;;  %vm398_vm6 = vcmp.lt.s32.totalorder %v390_v41, 128  ;;  %vm399_vm7 = vcmp.lt.s32.totalorder %v391_v44, 128 }
   0xf   : > { %s200_s27 = scalar_lea.vmem %s728_s0, %s555_s24  ;;  %590 = vmatpush3.bf16.msra.mxu0 %v623_v2  ;;  %610 = vmatpush3.bf16.msra.mxu1 %v623_v2  ;;  %s707_s12 = scalar_lea.vmem %s731_s3, %s557_s7  ;;  %vm400_vm8 = vcmp.lt.s32.totalorder %v392_v51, 128 }
  0x10   : > { %v626_v3 = vld [vmem:[%s200_s27] sm:$0xff]   ;;  %v628_v5 = vld [vmem:[%s200_s27 + $0x10] sm:$0xff]   ;;  %591 = vmatprep.subr.bf16.mxu0 %v624_v4  ;;  %606 = vmatprep.subr.bf16.mxu1 %v624_v4  ;;  %v627_v7 = vld [vmem:[%s200_s27 + $0x8] sm:$0xff]   ;;  %s558_s13 = sshll.u32 %s736_s16, 1 }
  0x11   : > { %595 = vmatprep.mubr.msk.bf16.mxu0 %vm288_vm0, %v626_v3  ;;  %599 = vmatprep.mubr.msk.bf16.mxu1 %vm288_vm0, %v628_v5  ;;  %v629_v8 = vld [vmem:[%s200_s27 + $0x18] sm:$0xff]   ;;  %s211_s18 = scalar_lea.vmem %s732_s4, %s558_s13 }
  0x13   : > { %592 = vmatpush3.bf16.msra.mxu0 %v624_v4  ;;  %611 = vmatpush3.bf16.msra.mxu1 %v624_v4 }
  0x14   : > { %593 = vmatprep.subr.bf16.mxu0 %v625_v6  ;;  %607 = vmatprep.subr.bf16.mxu1 %v625_v6 }
  0x17   : > { %594 = vmatpush3.bf16.msra.mxu0 %v625_v6  ;;  %612 = vmatpush3.bf16.msra.mxu1 %v625_v6 }
  0x1a   : > { %596 = vmatmul.mubr.msk.bf16.vlgmr.msra.gmra.mrb[0].mxu0 %vm288_vm0, %v627_v7  ;;  %600 = vmatmul.mubr.msk.bf16.vlgmr.msra.gmra.mrb[0].mxu1 %vm288_vm0, %v629_v8 }
  0xed   : > { %v597_v20 = vpop.f32.mrb[0].mxu0  ;;  %v601_v22 = vpop.f32.mrb[0].mxu1 }
  0xee   : > { %v344_v23 = vadd.f32 %v597_v20, %v559_v17  ;;  %v335_v24 = vpop.f32.mrb[1].mxu0  ;;  %v360_v25 = vadd.f32 %v601_v22, %v559_v17  ;;  %v351_v26 = vpop.f32.mrb[1].mxu1 }
  0xef   : > { %v336_v29 = vadd.f32 %v559_v17, %v335_v24  ;;  %v598_v30 = vpop.f32.mrb[2].mxu0  ;;  %v352_v32 = vadd.f32 %v559_v17, %v351_v26  ;;  %v602_v33 = vpop.f32.mrb[2].mxu1 }
  0xf0   : > { %368 = vst [vmem:[%s707_s12 + $0x10] sm:$0xff] %v344_v23  ;;  %v347_v34 = vadd.f32 %v598_v30, %v559_v17  ;;  %v338_v35 = vpop.f32.mrb[3].mxu0  ;;  %372 = vst [vmem:[%s707_s12 + $0x30] sm:$0xff] %v360_v25  ;;  %v363_v36 = vadd.f32 %v602_v33, %v559_v17  ;;  %v354_v37 = vpop.f32.mrb[3].mxu1  ;;  %v419_v42 = vsel %vm395_vm2, %v344_v23, 0.0  ;;  %v423_v62 = vsel %vm399_vm7, %v360_v25, 0.0 }
  0xf1   : > { %366 = vst [vmem:[%s707_s12] sm:$0xff] %v336_v29  ;;  %v417_v38 = vsel %vm393_vm1, %v336_v29, 0.0  ;;  %v339_v39 = vadd.f32 %v559_v17, %v338_v35  ;;  %370 = vst [vmem:[%s707_s12 + $0x20] sm:$0xff] %v352_v32  ;;  %v355_v48 = vadd.f32 %v559_v17, %v354_v37  ;;  %v421_v50 = vsel %vm397_vm5, %v352_v32, 0.0 }
  0xf2   : > { %369 = vst [vmem:[%s707_s12 + $0x18] sm:$0xff] %v347_v34  ;;  %373 = vst [vmem:[%s707_s12 + $0x38] sm:$0xff] %v363_v36  ;;  %v438_v45 = vmul.f32 %v417_v38, %v417_v38  ;;  %v420_v49 = vsel %vm396_vm4, %v347_v34, 0.0  ;;  %v440_v52 = vmul.f32 %v419_v42, %v419_v42  ;;  %v442_v58 = vmul.f32 %v421_v50, %v421_v50 }
  0xf3   : > { %367 = vst [vmem:[%s707_s12 + $0x8] sm:$0xff] %v339_v39  ;;  %v418_v43 = vsel %vm394_vm3, %v339_v39, 0.0  ;;  %371 = vst [vmem:[%s707_s12 + $0x28] sm:$0xff] %v355_v48  ;;  %v441_v55 = vmul.f32 %v420_v49, %v420_v49  ;;  %v422_v59 = vsel %vm398_vm6, %v355_v48, 0.0  ;;  %v424_v2 = vsel %vm400_vm8, %v363_v36, 0.0 }
  0xf4   : > { %v425_v46 = vadd.f32 %v418_v43, %v417_v38  ;;  %v439_v47 = vmul.f32 %v418_v43, %v418_v43  ;;  %v443_v1 = vmul.f32 %v422_v59, %v422_v59  ;;  %v444_v3 = vmul.f32 %v423_v62, %v423_v62 }
  0xf5   : > { %v445_v6 = vmul.f32 %v424_v2, %v424_v2 }
  0xf6   : > { %v426_v53 = vadd.f32 %v425_v46, %v419_v42  ;;  %v446_v54 = vadd.f32 %v439_v47, %v438_v45 }
  0xf8   : > { %v447_v56 = vadd.f32 %v446_v54, %v440_v52  ;;  %v427_v57 = vadd.f32 %v426_v53, %v420_v49 }
  0xfa   : > { %v428_v60 = vadd.f32 %v427_v57, %v421_v50  ;;  %v448_v61 = vadd.f32 %v447_v56, %v441_v55 }
  0xfc   : > { %v449_v63 = vadd.f32 %v448_v61, %v442_v58  ;;  %v429_v0 = vadd.f32 %v428_v60, %v422_v59 }
  0xfe   : > { %v430_v4 = vadd.f32 %v429_v0, %v423_v62  ;;  %v450_v5 = vadd.f32 %v449_v63, %v443_v1 }
 0x100   : > { %v431_v7 = vadd.f32 %v430_v4, %v424_v2  ;;  %v451_v8 = vadd.f32 %v450_v5, %v444_v3 }
 0x102   : > { %v432_v9 = vrot.slane %v431_v7, 4  ;;  %v452_v10 = vadd.f32 %v451_v8, %v445_v6 }
 0x104   : > { %v433_v11 = vadd.f32 %v432_v9, %v431_v7  ;;  %v453_v12 = vrot.slane %v452_v10, 4 }
 0x106   : > { %v434_v13 = vrot.slane %v433_v11, 2  ;;  %v454_v14 = vadd.f32 %v453_v12, %v452_v10 }
 0x108   : > { %v435_v15 = vadd.f32 %v434_v13, %v433_v11  ;;  %v455_v16 = vrot.slane %v454_v14, 2 }
 0x10a   : > { %v436_v17 = vrot.slane %v435_v15, 1  ;;  %v456_v18 = vadd.f32 %v455_v16, %v454_v14 }
 0x10c   : > { %v457_v19 = vrot.slane %v456_v18, 1  ;;  %v437_v20 = vadd.f32 %v436_v17, %v435_v15 }
 0x10e   : > { %v458_v21 = vadd.f32 %v457_v19, %v456_v18 }
 0x110   : > { %v460_v22 = vsel %vm459_vm9, %v437_v20, %v458_v21 }
 0x111   : > { %461 = vst [vmem:[%s211_s18] sm:$0x3] %v460_v22 }
 0x112 PF: > { %s15_s15 = sadd.s32 1, %s636_s15  }
 0x113   : > { %p12_p5 = scmp.ge.s32.totalorder %s15_s15, 4  }
 0x115   :  { %14 = sbr.rel (!%p12_p5) target bundleno = 1 (0x1), region = 74 }

// kernel: block_forward.14
= control target key start
LH: loop header
LB: loop body
LE: loop exit
PB: predicated region body
PF: predicated region fallthrough
CT: control target
= control target key end

     0   :  { %s603_s15 = smov 0   ;;  %s647_s0 = inlined_call_operand.vmem [shape: bf16[128,16], index: 0, kind: input, shape index: {}]   ;;  %s648_s1 = inlined_call_operand.vmem [shape: bf16[16,128], index: 1, kind: input, shape index: {}]   ;;  %s649_s2 = inlined_call_operand.vmem [shape: f32[1,128], index: 2, kind: input, shape index: {}]   ;;  %s650_s3 = inlined_call_operand.vmem [shape: f32[128,128], index: 3, kind: output, shape index: {0}]   ;;  %s651_s4 = inlined_call_operand.vmem [shape: f32[2,2,128], index: 4, kind: output, shape index: {1}]  }
   0x1 LB: > { %s609_s16 = sadd.s32 4294967295, %s576_s15   ;;  %p521_p0 = scmp.ge.s32.totalorder %s576_s15, 1  ;;  %s576_s15 = sphi %s603_s15, %s15_s15  }
   0x2   : > { %p166_p1 = scmp.lt.s32.totalorder %s576_s15, 3 }
   0x4   : > { %p167_p2 = pnand %p521_p0, %p166_p1 }
   0x5   : > { %v565_v0 = vld [vmem:[%s648_s1] sm:$0xff] (!%p167_p2)   ;;  %s522_s19 = sshll.u32 (!%p167_p2), %s609_s16, 3  ;;  %vm256_vm0 = vcmask (!%p167_p2), 130048   ;;  %v343_v5 = vlaneseq (!%p167_p2)  ;;  %s537_s24 = sshll.u32 (!%p167_p2), %s609_s16, 6  ;;  %vm427_vm9 = vcmask (!%p167_p2), 1040384  }
   0x6   : > { %170 = sbr.rel (%p167_p2) target bundleno = 266 (0x10a), region = 32  ;;  %p197_p3 = scmp.lt.s32.totalorder (!%p167_p2), %s522_s19, 15  ;;  %545 = vmatprep.subr.bf16.mxu0 (!%p167_p2), %v565_v0  ;;  %555 = vmatprep.subr.bf16.mxu1 (!%p167_p2), %v565_v0  ;;  %v352_v7 = vstv (!%p167_p2), %s537_s24  ;;  %v527_v13 = vld [vmem:[%s649_s2] ss:$0 sm:$0xff] (!%p167_p2) }
   0x7   : > { %546 = vmatpush3.bf16.msra.mxu0 (!%p167_p2), %v565_v0  ;;  %556 = vmatpush3.bf16.msra.mxu1 (!%p167_p2), %v565_v0  ;;  %v344_v6 = vshrl.u32 (!%p167_p2), %v343_v5, 7  ;;  %p208_p4 = scmp.lt.s32.totalorder (!%p167_p2), %s609_s16, 1 }
   0x9   : > { %v346_v8 = vadd.s32 (!%p167_p2), 16, %v344_v6  ;;  %v345_v9 = vadd.s32 (!%p167_p2), 8, %v344_v6  ;;  %v347_v10 = vadd.s32 (!%p167_p2), 24, %v344_v6  ;;  %v353_v11 = vadd.s32 (!%p167_p2), %v352_v7, %v344_v6 }
   0xa   : > { %v348_v12 = vadd.s32 (!%p167_p2), 32, %v344_v6  ;;  %v349_v21 = vadd.s32 (!%p167_p2), 40, %v344_v6  ;;  %v350_v25 = vadd.s32 (!%p167_p2), 48, %v344_v6  ;;  %v351_v34 = vadd.s32 (!%p167_p2), 56, %v344_v6 }
   0xb   : > { %v355_v14 = vadd.s32 (!%p167_p2), %v352_v7, %v346_v8  ;;  %v354_v15 = vadd.s32 (!%p167_p2), %v352_v7, %v345_v9  ;;  %v356_v17 = vadd.s32 (!%p167_p2), %v352_v7, %v347_v10  ;;  %vm361_vm1 = vcmp.lt.s32.totalorder (!%p167_p2), %v353_v11, 128 }
   0xc   : > { %v357_v20 = vadd.s32 (!%p167_p2), %v352_v7, %v348_v12  ;;  %v358_v37 = vadd.s32 (!%p167_p2), %v352_v7, %v349_v21  ;;  %v359_v40 = vadd.s32 (!%p167_p2), %v352_v7, %v350_v25  ;;  %v360_v46 = vadd.s32 (!%p167_p2), %v352_v7, %v351_v34 }
   0xd   : > { %s653_s19 = smov (!%p197_p3, %s522_s19), 15  ;;  %vm363_vm2 = vcmp.lt.s32.totalorder %v355_v14, 128  ;;  %vm362_vm3 = vcmp.lt.s32.totalorder %v354_v15, 128  ;;  %vm364_vm4 = vcmp.lt.s32.totalorder %v356_v17, 128  ;;  %s655_s16 = smov (!%p208_p4, %s609_s16), 1 }
   0xe   : > { %s523_s20 = sshll.u32 %s653_s19, 2  ;;  %s525_s25 = sshll.u32 %s653_s19, 3  ;;  %vm365_vm5 = vcmp.lt.s32.totalorder %v357_v20, 128  ;;  %vm366_vm6 = vcmp.lt.s32.totalorder %v358_v37, 128  ;;  %vm367_vm7 = vcmp.lt.s32.totalorder %v359_v40, 128  ;;  %vm368_vm8 = vcmp.lt.s32.totalorder %v360_v46, 128 }
   0xf   : > { %s200_s23 = scalar_lea.vmem %s647_s0, %s523_s20  ;;  %s627_s30 = scalar_lea.vmem %s650_s3, %s525_s25 }
  0x10   : > { %v566_v1 = vld [vmem:[%s200_s23] sm:$0xff]   ;;  %v567_v2 = vld [vmem:[%s200_s23 + $0x8] sm:$0xff]   ;;  %v568_v3 = vld [vmem:[%s200_s23 + $0x10] sm:$0xff]   ;;  %s526_s5 = sshll.u32 %s655_s16, 1 }
  0x11   : > { %547 = vmatprep.mubr.msk.bf16.mxu0 %vm256_vm0, %v566_v1  ;;  %v569_v4 = vld [vmem:[%s200_s23 + $0x18] sm:$0xff]   ;;  %551 = vmatprep.mubr.msk.bf16.mxu1 %vm256_vm0, %v568_v3  ;;  %s211_s8 = scalar_lea.vmem %s651_s4, %s526_s5 }
  0x12   : > { %548 = vmatmul.mubr.msk.bf16.vlgmr.msra.gmra.mrb[0].mxu0 %vm256_vm0, %v567_v2  ;;  %552 = vmatmul.mubr.msk.bf16.vlgmr.msra.gmra.mrb[0].mxu1 %vm256_vm0, %v569_v4 }
  0xe5   : > { %v549_v16 = vpop.f32.mrb[0].mxu0  ;;  %v553_v24 = vpop.f32.mrb[0].mxu1 }
  0xe6   : > { %v312_v18 = vadd.f32 %v549_v16, %v527_v13  ;;  %v303_v19 = vpop.f32.mrb[1].mxu0  ;;  %v328_v28 = vadd.f32 %v553_v24, %v527_v13  ;;  %v319_v29 = vpop.f32.mrb[1].mxu1 }
  0xe7   : > { %v304_v22 = vadd.f32 %v527_v13, %v303_v19  ;;  %v550_v23 = vpop.f32.mrb[2].mxu0  ;;  %v320_v32 = vadd.f32 %v527_v13, %v319_v29  ;;  %v554_v33 = vpop.f32.mrb[2].mxu1 }
  0xe8   : > { %336 = vst [vmem:[%s627_s30 + $0x10] sm:$0xff] %v312_v18  ;;  %v315_v26 = vadd.f32 %v550_v23, %v527_v13  ;;  %v306_v27 = vpop.f32.mrb[3].mxu0  ;;  %340 = vst [vmem:[%s627_s30 + $0x30] sm:$0xff] %v328_v28  ;;  %v331_v35 = vadd.f32 %v554_v33, %v527_v13  ;;  %v322_v36 = vpop.f32.mrb[3].mxu1  ;;  %v387_v38 = vsel %vm363_vm2, %v312_v18, 0.0  ;;  %v391_v58 = vsel %vm367_vm7, %v328_v28, 0.0 }
  0xe9   : > { %334 = vst [vmem:[%s627_s30] sm:$0xff] %v304_v22  ;;  %v385_v30 = vsel %vm361_vm1, %v304_v22, 0.0  ;;  %v307_v31 = vadd.f32 %v527_v13, %v306_v27  ;;  %338 = vst [vmem:[%s627_s30 + $0x20] sm:$0xff] %v320_v32  ;;  %v389_v45 = vsel %vm365_vm5, %v320_v32, 0.0  ;;  %v323_v47 = vadd.f32 %v527_v13, %v322_v36 }
  0xea   : > { %337 = vst [vmem:[%s627_s30 + $0x18] sm:$0xff] %v315_v26  ;;  %v406_v41 = vmul.f32 %v385_v30, %v385_v30  ;;  %341 = vst [vmem:[%s627_s30 + $0x38] sm:$0xff] %v331_v35  ;;  %v388_v44 = vsel %vm364_vm4, %v315_v26, 0.0  ;;  %v408_v48 = vmul.f32 %v387_v38, %v387_v38  ;;  %v410_v54 = vmul.f32 %v389_v45, %v389_v45 }
  0xeb   : > { %335 = vst [vmem:[%s627_s30 + $0x8] sm:$0xff] %v307_v31  ;;  %v386_v39 = vsel %vm362_vm3, %v307_v31, 0.0  ;;  %339 = vst [vmem:[%s627_s30 + $0x28] sm:$0xff] %v323_v47  ;;  %v409_v51 = vmul.f32 %v388_v44, %v388_v44  ;;  %v390_v55 = vsel %vm366_vm6, %v323_v47, 0.0  ;;  %v392_v62 = vsel %vm368_vm8, %v331_v35, 0.0 }
  0xec   : > { %v393_v42 = vadd.f32 %v386_v39, %v385_v30  ;;  %v407_v43 = vmul.f32 %v386_v39, %v386_v39  ;;  %v411_v61 = vmul.f32 %v390_v55, %v390_v55  ;;  %v412_v63 = vmul.f32 %v391_v58, %v391_v58 }
  0xed   : > { %v413_v2 = vmul.f32 %v392_v62, %v392_v62 }
  0xee   : > { %v394_v49 = vadd.f32 %v393_v42, %v387_v38  ;;  %v414_v50 = vadd.f32 %v407_v43, %v406_v41 }
  0xf0   : > { %v415_v52 = vadd.f32 %v414_v50, %v408_v48  ;;  %v395_v53 = vadd.f32 %v394_v49, %v388_v44 }
  0xf2   : > { %v396_v56 = vadd.f32 %v395_v53, %v389_v45  ;;  %v416_v57 = vadd.f32 %v415_v52, %v409_v51 }
  0xf4   : > { %v417_v59 = vadd.f32 %v416_v57, %v410_v54  ;;  %v397_v60 = vadd.f32 %v396_v56, %v390_v55 }
  0xf6   : > { %v398_v0 = vadd.f32 %v397_v60, %v391_v58  ;;  %v418_v1 = vadd.f32 %v417_v59, %v411_v61 }
  0xf8   : > { %v399_v3 = vadd.f32 %v398_v0, %v392_v62  ;;  %v419_v4 = vadd.f32 %v418_v1, %v412_v63 }
  0xfa   : > { %v400_v5 = vrot.slane %v399_v3, 4  ;;  %v420_v6 = vadd.f32 %v419_v4, %v413_v2 }
  0xfc   : > { %v401_v7 = vadd.f32 %v400_v5, %v399_v3  ;;  %v421_v8 = vrot.slane %v420_v6, 4 }
  0xfe   : > { %v402_v9 = vrot.slane %v401_v7, 2  ;;  %v422_v10 = vadd.f32 %v421_v8, %v420_v6 }
 0x100   : > { %v403_v11 = vadd.f32 %v402_v9, %v401_v7  ;;  %v423_v12 = vrot.slane %v422_v10, 2 }
 0x102   : > { %v404_v13 = vrot.slane %v403_v11, 1  ;;  %v424_v14 = vadd.f32 %v423_v12, %v422_v10 }
 0x104   : > { %v425_v15 = vrot.slane %v424_v14, 1  ;;  %v405_v16 = vadd.f32 %v404_v13, %v403_v11 }
 0x106   : > { %v426_v17 = vadd.f32 %v425_v15, %v424_v14 }
 0x108   : > { %v428_v18 = vsel %vm427_vm9, %v405_v16, %v426_v17 }
 0x109   : > { %429 = vst [vmem:[%s211_s8] sm:$0x3] %v428_v18 }
 0x10a PF: > { %s15_s15 = sadd.s32 1, %s576_s15  }
 0x10b   : > { %p12_p5 = scmp.ge.s32.totalorder %s15_s15, 4  }
 0x10d   :  { %14 = sbr.rel (!%p12_p5) target bundleno = 1 (0x1), region = 74 }

// kernel: block_forward.17
= control target key start
LH: loop header
LB: loop body
LE: loop exit
PB: predicated region body
PF: predicated region fallthrough
CT: control target
= control target key end

     0   :  { %s417_s15 = smov 0   ;;  %s468_s0 = inlined_call_operand.vmem [shape: f32[128,128], index: 0, kind: input, shape index: {}]   ;;  %s469_s1 = inlined_call_operand.vmem [shape: f32[1,128], index: 1, kind: input, shape index: {}]   ;;  %s470_s2 = inlined_call_operand.vmem [shape: f32[1,128], index: 2, kind: input, shape index: {}]   ;;  %s471_s3 = inlined_call_operand.vmem [shape: f32[128,128], index: 3, kind: input, shape index: {}]   ;;  %s472_s4 = inlined_call_operand.vmem [shape: f32[128,128], index: 4, kind: output, shape index: {}]  }
   0x1 LB: > { %s361_s16 = sadd.s32 4294967295, %s390_s15   ;;  %p365_p0 = scmp.ge.s32.totalorder %s390_s15, 1  ;;  %s390_s15 = sphi %s417_s15, %s14_s15  }
   0x2   : > { %p174_p1 = scmp.lt.s32.totalorder %s390_s15, 3 }
   0x4   : > { %p175_p2 = pnand %p365_p0, %p174_p1 }
   0x5   : > { %s366_s17 = sshll.u32 (!%p175_p2), %s361_s16, 3  ;;  %v372_v0 = vld [vmem:[%s469_s1] ss:$0 sm:$0xff] (!%p175_p2) }
   0x6   : > { %178 = sbr.rel (%p175_p2) target bundleno = 29 (0x1d), region = 36  ;;  %p206_p3 = scmp.lt.s32.totalorder (!%p175_p2), %s366_s17, 15  ;;  %v373_v2 = vld [vmem:[%s470_s2] ss:$0 sm:$0xff] (!%p175_p2) }
   0xd   : > { %s474_s17 = smov (!%p206_p3, %s366_s17), 15 }
   0xe   : > { %s425_s18 = sshll.u32 %s474_s17, 3 }
   0xf   : > { %s209_s23 = scalar_lea.vmem %s468_s0, %s425_s18  ;;  %s438_s26 = scalar_lea.vmem %s471_s3, %s425_s18 }
  0x10   : > { %v223_v1 = vld [vmem:[%s209_s23] sm:$0xff]  ;;  %v224_v3 = vld [vmem:[%s209_s23 + $0x8] sm:$0xff]  ;;  %v225_v6 = vld [vmem:[%s209_s23 + $0x10] sm:$0xff]  ;;  %s450_s5 = scalar_lea.vmem %s472_s4, %s425_s18 }
  0x11   : > { %v238_v4 = vmul.f32 %v372_v0, %v223_v1  ;;  %v239_v5 = vmul.f32 %v372_v0, %v224_v3  ;;  %v240_v7 = vmul.f32 %v372_v0, %v225_v6  ;;  %v226_v8 = vld [vmem:[%s209_s23 + $0x18] sm:$0xff]  ;;  %v227_v9 = vld [vmem:[%s209_s23 + $0x20] sm:$0xff]  ;;  %v228_v15 = vld [vmem:[%s209_s23 + $0x28] sm:$0xff] }
  0x12   : > { %v269_v11 = vld [vmem:[%s438_s26] sm:$0xff]  ;;  %v241_v13 = vmul.f32 %v372_v0, %v226_v8  ;;  %v242_v14 = vmul.f32 %v372_v0, %v227_v9  ;;  %v270_v16 = vld [vmem:[%s438_s26 + $0x8] sm:$0xff]  ;;  %v243_v18 = vmul.f32 %v372_v0, %v228_v15  ;;  %v229_v19 = vld [vmem:[%s209_s23 + $0x30] sm:$0xff] }
  0x13   : > { %v253_v10 = vadd.f32 %v373_v2, %v238_v4  ;;  %v254_v12 = vadd.f32 %v373_v2, %v239_v5  ;;  %v255_v17 = vadd.f32 %v373_v2, %v240_v7  ;;  %v230_v20 = vld [vmem:[%s209_s23 + $0x38] sm:$0xff]  ;;  %v271_v23 = vld [vmem:[%s438_s26 + $0x10] sm:$0xff]  ;;  %v273_v28 = vld [vmem:[%s438_s26 + $0x20] sm:$0xff]  ;;  %v244_v30 = vmul.f32 %v372_v0, %v229_v19 }
  0x14   : > { %v256_v24 = vadd.f32 %v373_v2, %v241_v13  ;;  %v257_v25 = vadd.f32 %v373_v2, %v242_v14  ;;  %v272_v27 = vld [vmem:[%s438_s26 + $0x18] sm:$0xff]  ;;  %v258_v29 = vadd.f32 %v373_v2, %v243_v18  ;;  %v245_v31 = vmul.f32 %v372_v0, %v230_v20  ;;  %v274_v36 = vld [vmem:[%s438_s26 + $0x28] sm:$0xff]  ;;  %v275_v43 = vld [vmem:[%s438_s26 + $0x30] sm:$0xff] }
  0x15   : > { %v261_v21 = vmax.f32 %v253_v10, 0.0  ;;  %v262_v22 = vmax.f32 %v254_v12, 0.0  ;;  %v263_v26 = vmax.f32 %v255_v17, 0.0  ;;  %v259_v39 = vadd.f32 %v373_v2, %v244_v30  ;;  %v276_v44 = vld [vmem:[%s438_s26 + $0x38] sm:$0xff] }
  0x16   : > { %v264_v34 = vmax.f32 %v256_v24, 0.0  ;;  %v265_v35 = vmax.f32 %v257_v25, 0.0  ;;  %v266_v38 = vmax.f32 %v258_v29, 0.0  ;;  %v260_v40 = vadd.f32 %v373_v2, %v245_v31 }
  0x17   : > { %v277_v32 = vadd.f32 %v269_v11, %v261_v21  ;;  %v278_v33 = vadd.f32 %v270_v16, %v262_v22  ;;  %v279_v37 = vadd.f32 %v271_v23, %v263_v26  ;;  %v267_v46 = vmax.f32 %v259_v39, 0.0 }
  0x18   : > { %v280_v41 = vadd.f32 %v272_v27, %v264_v34  ;;  %v281_v42 = vadd.f32 %v273_v28, %v265_v35  ;;  %v282_v45 = vadd.f32 %v274_v36, %v266_v38  ;;  %v268_v47 = vmax.f32 %v260_v40, 0.0 }
  0x19   : > { %285 = vst [vmem:[%s450_s5] sm:$0xff] %v277_v32  ;;  %286 = vst [vmem:[%s450_s5 + $0x8] sm:$0xff] %v278_v33  ;;  %v283_v48 = vadd.f32 %v275_v43, %v267_v46 }
  0x1a   : > { %287 = vst [vmem:[%s450_s5 + $0x10] sm:$0xff] %v279_v37  ;;  %288 = vst [vmem:[%s450_s5 + $0x18] sm:$0xff] %v280_v41  ;;  %v284_v49 = vadd.f32 %v276_v44, %v268_v47 }
  0x1b   : > { %289 = vst [vmem:[%s450_s5 + $0x20] sm:$0xff] %v281_v42  ;;  %290 = vst [vmem:[%s450_s5 + $0x28] sm:$0xff] %v282_v45 }
  0x1c   : > { %291 = vst [vmem:[%s450_s5 + $0x30] sm:$0xff] %v283_v48  ;;  %292 = vst [vmem:[%s450_s5 + $0x38] sm:$0xff] %v284_v49 }
  0x1d PF: > { %s14_s15 = sadd.s32 1, %s390_s15  }
  0x1e   : > { %p11_p4 = scmp.ge.s32.totalorder %s14_s15, 4  }
  0x20   :  { %13 = sbr.rel (!%p11_p4) target bundleno = 1 (0x1), region = 69 }

// kernel: block_forward.23
= control target key start
LH: loop header
LB: loop body
LE: loop exit
PB: predicated region body
PF: predicated region fallthrough
CT: control target
= control target key end

     0   :  { %8 = vsyncpa [#allocation3], 0  ;;  %s549_s0 = inlined_call_operand.vmem [shape: f32[128,128], index: 0, kind: input, shape index: {}]   ;;  %s550_s1 = inlined_call_operand.vmem [shape: f32[1,128], index: 1, kind: input, shape index: {}]   ;;  %s551_s2 = inlined_call_operand.vmem [shape: f32[1,128], index: 2, kind: input, shape index: {}]   ;;  %s552_s3 = inlined_call_operand.hbm [shape: f32[128,128], index: 3, kind: output, shape index: {}]  }
   0x1   :  { %10 = vsyncpa [#allocation3 + $0x1], 0  ;;  %s437_s12 = smov 0   ;;  %s439_s13 = smov 0  }
   0x2   :  { %s441_s14 = smov 0   ;;  %s443_s15 = smov 0  }
   0x3 LB: > { %s458_s16 = sadd.s32 4294967295, %s412_s15   ;;  %s294_s17 = sadd.s32 4294967294, %s412_s15   ;;  %s412_s15 = sphi %s443_s15, %s558_s15   ;;  %s408_s14 = sphi %s441_s14, %s557_s14   ;;  %s404_s13 = sphi %s439_s13, %s556_s13   ;;  %s400_s12 = sphi %s437_s12, %s555_s12  }
   0x4   : > { %s462_s18 = sadd.s32 1, %s412_s15   ;;  %s91_s19 = sadd.s32 1, %s408_s14 }
   0x5   : > { %s88_s20 = ssub.s32 %s412_s15, %s462_s18  ;;  %p101_p0 = scmp.ne.s32.totalorder %s408_s14, %s404_s13 }
   0x6   : > { %p89_p1 = scmp.eq.s32.totalorder %s88_s20, 0  ;;  %p102_p2 = scmp.eq.s32.totalorder %s458_s16, 1 }
   0x7   : > { %p107_p3 = scmp.ne.s32.totalorder %s404_s13, %s400_s12  ;;  %p108_p4 = scmp.eq.s32.totalorder %s294_s17, 1 }
   0x8   : > { %s473_s21 = scalar_select %p89_p1, %s408_s14, %s91_s19  }
   0x9   : > { %p475_p5 = por %p102_p2, %p101_p0  ;;  %p479_p6 = por %p108_p4, %p107_p3 }
   0xa   : > { %p297_p7 = scmp.ge.s32.totalorder %s412_s15, 1  ;;  %p141_p8 = scmp.lt.s32.totalorder %s412_s15, 3 }
   0xc   : > { %p142_p9 = pnand %p297_p7, %p141_p8 }
   0xd   : > { %s162_s24 = sand.u32 (!%p142_p9), 1, %s404_s13   ;;  %s299_s25 = sshll.u32 (!%p142_p9), %s458_s16, 3  ;;  %v301_v0 = vld [vmem:[%s550_s1] ss:$0 sm:$0xff] (!%p142_p9) }
   0xe   : > { %145 = sbr.rel (%p142_p9) target bundleno = 47 (0x2f), region = 32  ;;  %p166_p10 = scmp.lt.s32.totalorder (!%p142_p9), %s299_s25, 15  ;;  %v302_v1 = vld [vmem:[%s551_s2] ss:$0 sm:$0xff] (!%p142_p9) }
   0xf   : > { %s298_s26 = sshll.u32 (!%p142_p9), %s162_s24, 6  ;;  %s308_s10 = sshll.u32 (!%p142_p9), %s458_s16, 10 }
  0x10   : > { %s164_s8 = scalar_lea.vmem (!%p142_p9), [#allocation2], %s298_s26  ;;  %s504_s17 = scalar_lea.hbm (!%p142_p9), %s552_s3, %s308_s10 }
  0x11   : > { %s232_s9 = sshll.u32 (!%p142_p9), %s164_s8, 4  ;;  %s508_s19 = scalar_lea.sflag (!%p142_p9), [#allocation3], %s162_s24  ;;  %s499_s9 = int_to_ptr.vmem [resolvable:$true] %s232_s9 }
  0x12   : > { %s350_s20 = scalar_lea.vmem (!%p142_p9), %s499_s9, 1024 }
  0x13   : > { %p351_p11 = scmp.ne.s32.totalorder (!%p142_p9), %s499_s9, %s350_s20 }
  0x15   : > { %s560_s25 = smov (!%p166_p10, %s299_s25), 15  ;;  %p352_p12 = pnand %p351_p11, %p475_p5 }
  0x16   : > { %s300_s27 = sshll.u32 %s560_s25, 3  ;;  %s414_s25 = smov [#allocation2]  }
  0x17   : > { %s169_s5 = scalar_lea.vmem %s549_s0, %s300_s27  ;;  %p353_p13 = pneg %p352_p12 }
  0x18   : > { %v172_v2 = vld [vmem:[%s169_s5] sm:$0xff]  ;;  %v173_v3 = vld [vmem:[%s169_s5 + $0x8] sm:$0xff]  ;;  %v174_v4 = vld [vmem:[%s169_s5 + $0x10] sm:$0xff]  ;;  %s354_s26 = sshll.u32 %s414_s25, 4  ;;  %s355_s26 = int_to_ptr.vmem [resolvable:$false] %s354_s26 }
  0x19   : > { %v187_v5 = vmul.f32 %v301_v0, %v172_v2  ;;  %v188_v6 = vmul.f32 %v301_v0, %v173_v3  ;;  %v189_v7 = vmul.f32 %v301_v0, %v174_v4  ;;  %v175_v8 = vld [vmem:[%s169_s5 + $0x18] sm:$0xff]  ;;  %v176_v9 = vld [vmem:[%s169_s5 + $0x20] sm:$0xff]  ;;  %v177_v10 = vld [vmem:[%s169_s5 + $0x28] sm:$0xff]  ;;  %s356_s27 = scalar_lea.vmem %s355_s26, 2048  ;;  %p357_p0 = scmp.lt.s32.totalorder %s499_s9, %s355_s26 }
  0x1a   : > { %v190_v11 = vmul.f32 %v301_v0, %v175_v8  ;;  %v191_v12 = vmul.f32 %v301_v0, %v176_v9  ;;  %v192_v13 = vmul.f32 %v301_v0, %v177_v10  ;;  %v178_v14 = vld [vmem:[%s169_s5 + $0x30] sm:$0xff]  ;;  %v179_v15 = vld [vmem:[%s169_s5 + $0x38] sm:$0xff]  ;;  %p358_p1 = scmp.lt.s32.totalorder %s356_s27, %s350_s20 }
  0x1b   : > { %v202_v16 = vadd.f32 %v302_v1, %v187_v5  ;;  %v203_v17 = vadd.f32 %v302_v1, %v188_v6  ;;  %v204_v18 = vadd.f32 %v302_v1, %v189_v7  ;;  %v193_v19 = vmul.f32 %v301_v0, %v178_v14 }
  0x1c   : > { %v205_v20 = vadd.f32 %v302_v1, %v190_v11  ;;  %v206_v21 = vadd.f32 %v302_v1, %v191_v12  ;;  %v207_v22 = vadd.f32 %v302_v1, %v192_v13  ;;  %v194_v23 = vmul.f32 %v301_v0, %v179_v15  ;;  %p359_p2 = por %p358_p1, %p357_p0 }
  0x1d   : > { %210 = vst [vmem:[%s164_s8] sm:$0xff] %v202_v16  ;;  %211 = vst [vmem:[%s164_s8 + $0x8] sm:$0xff] %v203_v17  ;;  %v208_v24 = vadd.f32 %v302_v1, %v193_v19 }
  0x1e   : > { %212 = vst [vmem:[%s164_s8 + $0x10] sm:$0xff] %v204_v18  ;;  %213 = vst [vmem:[%s164_s8 + $0x18] sm:$0xff] %v205_v20  ;;  %v209_v25 = vadd.f32 %v302_v1, %v194_v23  ;;  %p360_p3 = pnand %p359_p2, %p353_p13 }
  0x1f   : > { %214 = vst [vmem:[%s164_s8 + $0x20] sm:$0xff] %v206_v21  ;;  %215 = vst [vmem:[%s164_s8 + $0x28] sm:$0xff] %v207_v22 }
  0x20   : > { %216 = vst [vmem:[%s164_s8 + $0x30] sm:$0xff] %v208_v24  ;;  %217 = vst [vmem:[%s164_s8 + $0x38] sm:$0xff] %v209_v25 }
  0x21   : > { %363 = shalt.err (!%p360_p3)
}
  0x22   : > { %s364_s24 = scalar_lea.hbm %s504_s17, 1024  ;;  %s368_s30 = scalar_lea.hbm %s552_s3, 2048 }
  0x23   : > { %p365_p4 = scmp.ne.s32.totalorder %s504_s17, %s364_s24  ;;  %p369_p9 = scmp.lt.u32.totalorder %s504_s17, %s552_s3 }
  0x24   : > { %p370_p10 = scmp.lt.u32.totalorder %s368_s30, %s364_s24  ;;  %p372_p12 = scmp.lt.u32.totalorder %s364_s24, %s504_s17 }
  0x25   : > { %p366_p7 = pnand %p365_p4, %p475_p5 }
  0x26   : > { %p371_p11 = por %p370_p10, %p369_p9 }
  0x27   : > { %p367_p8 = pneg %p366_p7 }
  0x28   : > { %p373_p13 = por %p372_p12, %p371_p11 }
  0x2a   : > { %p374_p0 = pnand %p373_p13, %p367_p8 }
  0x2c   : > { %377 = shalt.err (!%p374_p0)
}
  0x2d   : > { %s415_s6 = smov 128   ;;  %s416_s7 = smov 8  }
  0x2e   : > { %309 = dma.vmem_to_hbm [thread:$0]  (%p475_p5), %s499_s9, 1024, %s504_s17, %s508_s19, %s415_s6, %s415_s6, %s416_s7  }
  0x2f PF: > { %p315_p1 = scmp.ge.s32.totalorder %s412_s15, 2  ;;  %s247_s8 = sand.u32 1, %s400_s12  }
  0x30   : > { %s248_s10 = scalar_lea.sflag [#allocation3], %s247_s8 }
  0x31   : > { %p312_p2 = pnand %p315_p1, %p479_p6 }
  0x33   : > { %395 = dma.done.wait (!%p312_p2), %s248_s10, 1024  }
  0x34   : > { %397 = vsyncadd (!%p312_p2), %s248_s10, 4294966272  ;;  %p13_p3 = scmp.ge.s32.totalorder %s462_s18, 4   ;;  %s555_s12 = smov %s404_s13 }
  0x35   : > { %s556_s13 = smov %s408_s14  ;;  %s557_s14 = smov %s473_s21 }
  0x36   : > { %s558_s15 = smov %s462_s18  ;;  %15 = sbr.rel (!%p13_p3) target bundleno = 3 (0x3), region = 67 }
  0x3d   :  { %253 = vsyncpa [#allocation3], 1 }
  0x3e   :  { %255 = vsyncpa [#allocation3 + $0x1], 1 }

// kernel: block_forward.20
= control target key start
LH: loop header
LB: loop body
LE: loop exit
PB: predicated region body
PF: predicated region fallthrough
CT: control target
= control target key end

     0   :  { %s618_s15 = smov 0   ;;  %s669_s0 = inlined_call_operand.vmem [shape: bf16[128,32], index: 0, kind: input, shape index: {}]   ;;  %s670_s1 = inlined_call_operand.vmem [shape: bf16[32,128], index: 1, kind: input, shape index: {}]   ;;  %s671_s2 = inlined_call_operand.vmem [shape: f32[1,128], index: 2, kind: input, shape index: {}]   ;;  %s672_s3 = inlined_call_operand.vmem [shape: f32[128,128], index: 3, kind: output, shape index: {0}]   ;;  %s673_s4 = inlined_call_operand.vmem [shape: f32[2,2,128], index: 4, kind: output, shape index: {1}]  }
   0x1 LB: > { %s624_s16 = sadd.s32 4294967295, %s591_s15   ;;  %p529_p0 = scmp.ge.s32.totalorder %s591_s15, 1  ;;  %s591_s15 = sphi %s618_s15, %s15_s15  }
   0x2   : > { %p166_p1 = scmp.lt.s32.totalorder %s591_s15, 3 }
   0x4   : > { %p167_p2 = pnand %p529_p0, %p166_p1 }
   0x5   : > { %v579_v0 = vld [vmem:[%s670_s1] sm:$0xff] (!%p167_p2)   ;;  %s530_s19 = sshll.u32 (!%p167_p2), %s624_s16, 3  ;;  %v580_v1 = vld [vmem:[%s670_s1 + $0x8] sm:$0xff] (!%p167_p2)   ;;  %vm264_vm0 = vcmask (!%p167_p2), 261120   ;;  %v351_v6 = vlaneseq (!%p167_p2)  ;;  %s546_s26 = sshll.u32 (!%p167_p2), %s624_s16, 6  ;;  %vm435_vm9 = vcmask (!%p167_p2), 1040384  }
   0x6   : > { %170 = sbr.rel (%p167_p2) target bundleno = 266 (0x10a), region = 32  ;;  %p197_p3 = scmp.lt.s32.totalorder (!%p167_p2), %s530_s19, 15  ;;  %555 = vmatprep.subr.bf16.mxu0 (!%p167_p2), %v579_v0  ;;  %567 = vmatprep.subr.bf16.mxu1 (!%p167_p2), %v579_v0  ;;  %v360_v8 = vstv (!%p167_p2), %s546_s26  ;;  %v535_v14 = vld [vmem:[%s671_s2] ss:$0 sm:$0xff] (!%p167_p2) }
   0x7   : > { %556 = vmatpush3.bf16.msra.mxu0 (!%p167_p2), %v579_v0  ;;  %569 = vmatpush3.bf16.msra.mxu1 (!%p167_p2), %v579_v0  ;;  %v352_v7 = vshrl.u32 (!%p167_p2), %v351_v6, 7  ;;  %p208_p4 = scmp.lt.s32.totalorder (!%p167_p2), %s624_s16, 1 }
   0x8   : > { %557 = vmatprep.subr.bf16.mxu0 (!%p167_p2), %v580_v1  ;;  %568 = vmatprep.subr.bf16.mxu1 (!%p167_p2), %v580_v1 }
   0x9   : > { %v354_v9 = vadd.s32 (!%p167_p2), 16, %v352_v7  ;;  %v353_v10 = vadd.s32 (!%p167_p2), 8, %v352_v7  ;;  %v355_v11 = vadd.s32 (!%p167_p2), 24, %v352_v7  ;;  %v361_v12 = vadd.s32 (!%p167_p2), %v360_v8, %v352_v7 }
   0xa   : > { %v356_v13 = vadd.s32 (!%p167_p2), 32, %v352_v7  ;;  %v357_v22 = vadd.s32 (!%p167_p2), 40, %v352_v7  ;;  %v358_v26 = vadd.s32 (!%p167_p2), 48, %v352_v7  ;;  %v359_v35 = vadd.s32 (!%p167_p2), 56, %v352_v7 }
   0xb   : > { %558 = vmatpush3.bf16.msra.mxu0 (!%p167_p2), %v580_v1  ;;  %570 = vmatpush3.bf16.msra.mxu1 (!%p167_p2), %v580_v1  ;;  %v363_v15 = vadd.s32 (!%p167_p2), %v360_v8, %v354_v9  ;;  %v362_v16 = vadd.s32 (!%p167_p2), %v360_v8, %v353_v10  ;;  %v364_v18 = vadd.s32 (!%p167_p2), %v360_v8, %v355_v11  ;;  %vm369_vm1 = vcmp.lt.s32.totalorder (!%p167_p2), %v361_v12, 128 }
   0xc   : > { %v365_v21 = vadd.s32 (!%p167_p2), %v360_v8, %v356_v13  ;;  %v366_v38 = vadd.s32 (!%p167_p2), %v360_v8, %v357_v22  ;;  %v367_v41 = vadd.s32 (!%p167_p2), %v360_v8, %v358_v26  ;;  %v368_v47 = vadd.s32 (!%p167_p2), %v360_v8, %v359_v35 }
   0xd   : > { %s675_s19 = smov (!%p197_p3, %s530_s19), 15  ;;  %vm371_vm2 = vcmp.lt.s32.totalorder %v363_v15, 128  ;;  %vm370_vm3 = vcmp.lt.s32.totalorder %v362_v16, 128  ;;  %vm372_vm4 = vcmp.lt.s32.totalorder %v364_v18, 128  ;;  %s677_s16 = smov (!%p208_p4, %s624_s16), 1 }
   0xe   : > { %s531_s22 = sshll.u32 %s675_s19, 2  ;;  %s533_s27 = sshll.u32 %s675_s19, 3  ;;  %vm373_vm5 = vcmp.lt.s32.totalorder %v365_v21, 128  ;;  %vm374_vm6 = vcmp.lt.s32.totalorder %v366_v38, 128  ;;  %vm375_vm7 = vcmp.lt.s32.totalorder %v367_v41, 128  ;;  %vm376_vm8 = vcmp.lt.s32.totalorder %v368_v47, 128 }
   0xf   : > { %s200_s25 = scalar_lea.vmem %s669_s0, %s531_s22  ;;  %s649_s6 = scalar_lea.vmem %s672_s3, %s533_s27 }
  0x10   : > { %v581_v2 = vld [vmem:[%s200_s25] sm:$0xff]   ;;  %v582_v3 = vld [vmem:[%s200_s25 + $0x8] sm:$0xff]   ;;  %v583_v4 = vld [vmem:[%s200_s25 + $0x10] sm:$0xff]   ;;  %s534_s7 = sshll.u32 %s677_s16, 1 }
  0x11   : > { %559 = vmatprep.mubr.msk.bf16.mxu0 %vm264_vm0, %v581_v2  ;;  %v584_v5 = vld [vmem:[%s200_s25 + $0x18] sm:$0xff]   ;;  %563 = vmatprep.mubr.msk.bf16.mxu1 %vm264_vm0, %v583_v4  ;;  %s211_s10 = scalar_lea.vmem %s673_s4, %s534_s7 }
  0x12   : > { %560 = vmatmul.mubr.msk.bf16.vlgmr.msra.gmra.mrb[0].mxu0 %vm264_vm0, %v582_v3  ;;  %564 = vmatmul.mubr.msk.bf16.vlgmr.msra.gmra.mrb[0].mxu1 %vm264_vm0, %v584_v5 }
  0xe5   : > { %v561_v17 = vpop.f32.mrb[0].mxu0  ;;  %v565_v25 = vpop.f32.mrb[0].mxu1 }
  0xe6   : > { %v320_v19 = vadd.f32 %v561_v17, %v535_v14  ;;  %v311_v20 = vpop.f32.mrb[1].mxu0  ;;  %v336_v29 = vadd.f32 %v565_v25, %v535_v14  ;;  %v327_v30 = vpop.f32.mrb[1].mxu1 }
  0xe7   : > { %v312_v23 = vadd.f32 %v535_v14, %v311_v20  ;;  %v562_v24 = vpop.f32.mrb[2].mxu0  ;;  %v328_v33 = vadd.f32 %v535_v14, %v327_v30  ;;  %v566_v34 = vpop.f32.mrb[2].mxu1 }
  0xe8   : > { %344 = vst [vmem:[%s649_s6 + $0x10] sm:$0xff] %v320_v19  ;;  %v323_v27 = vadd.f32 %v562_v24, %v535_v14  ;;  %v314_v28 = vpop.f32.mrb[3].mxu0  ;;  %348 = vst [vmem:[%s649_s6 + $0x30] sm:$0xff] %v336_v29  ;;  %v339_v36 = vadd.f32 %v566_v34, %v535_v14  ;;  %v330_v37 = vpop.f32.mrb[3].mxu1  ;;  %v395_v39 = vsel %vm371_vm2, %v320_v19, 0.0  ;;  %v399_v59 = vsel %vm375_vm7, %v336_v29, 0.0 }
  0xe9   : > { %342 = vst [vmem:[%s649_s6] sm:$0xff] %v312_v23  ;;  %v393_v31 = vsel %vm369_vm1, %v312_v23, 0.0  ;;  %v315_v32 = vadd.f32 %v535_v14, %v314_v28  ;;  %346 = vst [vmem:[%s649_s6 + $0x20] sm:$0xff] %v328_v33  ;;  %v397_v46 = vsel %vm373_vm5, %v328_v33, 0.0  ;;  %v331_v48 = vadd.f32 %v535_v14, %v330_v37 }
  0xea   : > { %345 = vst [vmem:[%s649_s6 + $0x18] sm:$0xff] %v323_v27  ;;  %v414_v42 = vmul.f32 %v393_v31, %v393_v31  ;;  %349 = vst [vmem:[%s649_s6 + $0x38] sm:$0xff] %v339_v36  ;;  %v396_v45 = vsel %vm372_vm4, %v323_v27, 0.0  ;;  %v416_v49 = vmul.f32 %v395_v39, %v395_v39  ;;  %v418_v55 = vmul.f32 %v397_v46, %v397_v46 }
  0xeb   : > { %343 = vst [vmem:[%s649_s6 + $0x8] sm:$0xff] %v315_v32  ;;  %v394_v40 = vsel %vm370_vm3, %v315_v32, 0.0  ;;  %347 = vst [vmem:[%s649_s6 + $0x28] sm:$0xff] %v331_v48  ;;  %v417_v52 = vmul.f32 %v396_v45, %v396_v45  ;;  %v398_v56 = vsel %vm374_vm6, %v331_v48, 0.0  ;;  %v400_v63 = vsel %vm376_vm8, %v339_v36, 0.0 }
  0xec   : > { %v401_v43 = vadd.f32 %v394_v40, %v393_v31  ;;  %v415_v44 = vmul.f32 %v394_v40, %v394_v40  ;;  %v419_v62 = vmul.f32 %v398_v56, %v398_v56  ;;  %v420_v0 = vmul.f32 %v399_v59, %v399_v59 }
  0xed   : > { %v421_v3 = vmul.f32 %v400_v63, %v400_v63 }
  0xee   : > { %v402_v50 = vadd.f32 %v401_v43, %v395_v39  ;;  %v422_v51 = vadd.f32 %v415_v44, %v414_v42 }
  0xf0   : > { %v423_v53 = vadd.f32 %v422_v51, %v416_v49  ;;  %v403_v54 = vadd.f32 %v402_v50, %v396_v45 }
  0xf2   : > { %v404_v57 = vadd.f32 %v403_v54, %v397_v46  ;;  %v424_v58 = vadd.f32 %v423_v53, %v417_v52 }
  0xf4   : > { %v425_v60 = vadd.f32 %v424_v58, %v418_v55  ;;  %v405_v61 = vadd.f32 %v404_v57, %v398_v56 }
  0xf6   : > { %v406_v1 = vadd.f32 %v405_v61, %v399_v59  ;;  %v426_v2 = vadd.f32 %v425_v60, %v419_v62 }
  0xf8   : > { %v407_v4 = vadd.f32 %v406_v1, %v400_v63  ;;  %v427_v5 = vadd.f32 %v426_v2, %v420_v0 }
  0xfa   : > { %v408_v6 = vrot.slane %v407_v4, 4  ;;  %v428_v7 = vadd.f32 %v427_v5, %v421_v3 }
  0xfc   : > { %v409_v8 = vadd.f32 %v408_v6, %v407_v4  ;;  %v429_v9 = vrot.slane %v428_v7, 4 }
  0xfe   : > { %v410_v10 = vrot.slane %v409_v8, 2  ;;  %v430_v11 = vadd.f32 %v429_v9, %v428_v7 }
 0x100   : > { %v411_v12 = vadd.f32 %v410_v10, %v409_v8  ;;  %v431_v13 = vrot.slane %v430_v11, 2 }
 0x102   : > { %v412_v14 = vrot.slane %v411_v12, 1  ;;  %v432_v15 = vadd.f32 %v431_v13, %v430_v11 }
 0x104   : > { %v433_v16 = vrot.slane %v432_v15, 1  ;;  %v413_v17 = vadd.f32 %v412_v14, %v411_v12 }
 0x106   : > { %v434_v18 = vadd.f32 %v433_v16, %v432_v15 }
 0x108   : > { %v436_v19 = vsel %vm435_vm9, %v413_v17, %v434_v18 }
 0x109   : > { %437 = vst [vmem:[%s211_s10] sm:$0x3] %v436_v19 }
 0x10a PF: > { %s15_s15 = sadd.s32 1, %s591_s15  }
 0x10b   : > { %p12_p5 = scmp.ge.s32.totalorder %s15_s15, 4  }
 0x10d   :  { %14 = sbr.rel (!%p12_p5) target bundleno = 1 (0x1), region = 74 }

</bundles_post_ra>
